<compile_context>
chip_gen: v7x
topology: tpu7x:2x2x1
jax: 0.10.0
libtpu: 0.0.40
codegen_flags: <defaults>
</compile_context>

<pallas_src>
import numpy as np
import jax
import jax.numpy as jnp
from jax import lax
from jax.experimental import pallas as pl
from jax.experimental.pallas import tpu as pltpu


# ----------------------------------------------------------------------------
# Relative position index (parameter setup / glue — plain numpy, mirrors torch)
# ----------------------------------------------------------------------------
def make_relative_position_index(window_size):
    Wh, Ww = window_size
    num_rel = (2 * Wh - 1) * (2 * Ww - 1) + 3
    coords_h = np.arange(Wh)
    coords_w = np.arange(Ww)
    coords = np.stack(np.meshgrid(coords_h, coords_w, indexing="ij"))   # (2, Wh, Ww)
    coords_flatten = coords.reshape(2, -1)                              # (2, Wh*Ww)
    rel = coords_flatten[:, :, None] - coords_flatten[:, None, :]       # (2, M, M)
    rel = rel.transpose(1, 2, 0).copy()                                 # (M, M, 2)
    rel[:, :, 0] += Wh - 1
    rel[:, :, 1] += Ww - 1
    rel[:, :, 0] *= 2 * Ww - 1
    M = Wh * Ww
    rpi = np.zeros((M + 1, M + 1), dtype=np.int64)
    rpi[1:, 1:] = rel.sum(-1)
    rpi[0, 0:] = num_rel - 3
    rpi[0:, 0] = num_rel - 2
    rpi[0, 0] = num_rel - 1
    return rpi, num_rel


# ----------------------------------------------------------------------------
# In-kernel helpers (only ops with guaranteed Mosaic lowering)
# ----------------------------------------------------------------------------
def _erf(x):
    # Abramowitz & Stegun 7.1.26 polynomial (|err| < 1.5e-7): exact-GELU semantics
    # of nn.GELU without relying on an erf lowering rule.
    p = 0.3275911
    a1, a2, a3, a4, a5 = 0.254829592, -0.284496736, 1.421413741, -1.453152027, 1.061405429
    ax = jnp.abs(x)
    t = 1.0 / (1.0 + p * ax)
    poly = t * (a1 + t * (a2 + t * (a3 + t * (a4 + t * a5))))
    y = 1.0 - poly * jnp.exp(-ax * ax)
    return jnp.where(x >= 0, y, -y)


def _gelu_exact(x):
    return 0.5 * x * (1.0 + _erf(x * 0.7071067811865476))


def _ln_noaffine(x, eps=1e-5):
    # LayerNorm without affine; gamma/beta are folded into the following matmul.
    mu = jnp.mean(x, axis=-1, keepdims=True)
    xc = x - mu
    var = jnp.mean(xc * xc, axis=-1, keepdims=True)
    return xc * lax.rsqrt(var + eps)


# ----------------------------------------------------------------------------
# Pallas kernel: `block_b` batch elements per grid step, all heads fused
# ----------------------------------------------------------------------------
def _block_kernel(x_ref, wqkv_ref, vecs_ref, relb_ref, wproj_ref,
                  wfc1_ref, wfc2_ref, o_ref):
    Bb, N, C = x_ref.shape
    H, D, _ = wproj_ref.shape
    HD = H * D
    HID = wfc1_ref.shape[1]

    x = x_ref[...].reshape(Bb * N, C)                                   # (Bb*N, C)

    # ---- LN1 (affine folded into Wqkv) + fused QKV projection (all heads) ----
    xn = _ln_noaffine(x)
    qkv = jnp.dot(xn, wqkv_ref[...],
                  preferred_element_type=jnp.float32) + vecs_ref[0:1, :3 * HD]  # (Bb*N, 3HD)

    # ---- per-(batch-row, head) attention; projection accumulated per head ----
    # TODO(synk): q/k/v head slices still sit at 8-element lane offsets; verify
    # residual relayout cost in the bundle dump (modest at C=32).
    attn_rows = []
    for b in range(Bb):
        r0 = b * N
        acc = None
        for h in range(H):
            qh = qkv[r0:r0 + N, h * D:(h + 1) * D]              # scale pre-folded into Wq
            kh = qkv[r0:r0 + N, HD + h * D:HD + (h + 1) * D]
            vh = qkv[r0:r0 + N, 2 * HD + h * D:2 * HD + (h + 1) * D]
            # contract both D axes -> no in-kernel transpose of k
            s = lax.dot_general(qh, kh, (((1,), (1,)), ((), ())),
                                preferred_element_type=jnp.float32)      # (N, N)
            s = s + relb_ref[h]
            m = jnp.max(s, axis=-1, keepdims=True)
            p = jnp.exp(s - m)
            l = jnp.sum(p, axis=-1, keepdims=True)
            pv = jnp.dot(p, vh, preferred_element_type=jnp.float32)      # (N, D)
            # EUP reciprocal, applied to the small (N, D) tile, not the (N, N) scores.
            pv = pv * pl.reciprocal(l, approx=True)
            # per-head projection (gamma_1 folded into wproj) accumulated in f32
            c = jnp.dot(pv, wproj_ref[h], preferred_element_type=jnp.float32)  # (N, C)
            acc = c if acc is None else acc + c
        attn_rows.append(acc)
    attn = attn_rows[0] if Bb == 1 else jnp.concatenate(attn_rows, axis=0)      # (Bb*N, C)

    # ---- first residual (gamma_1 already folded into wproj / bproj row) ----
    x1 = x + attn + vecs_ref[1:2, :C]

    # ---- LN2 (affine folded into Wfc1) + MLP (gamma_2 folded into Wfc2) ----
    xn2 = _ln_noaffine(x1)
    hmid = jnp.dot(xn2, wfc1_ref[...],
                   preferred_element_type=jnp.float32) + vecs_ref[2:3, :HID]    # (Bb*N, HID)
    hmid = _gelu_exact(hmid)
    mlp = jnp.dot(hmid, wfc2_ref[...],
                  preferred_element_type=jnp.float32) + vecs_ref[3:4, :C]       # (Bb*N, C)

    # TODO(synk): attn_drop / proj_drop / MLP drop / DropPath are identity in eval mode.
    o_ref[...] = (x1 + mlp).reshape(Bb, N, C)


def _pick_block_b(B):
    """Largest per-step batch block that still leaves >= 2 grid steps (v7x megacore)."""
    if B <= 2:
        return 1
    best = 1
    for cand in range(1, B // 2 + 1):
        if B % cand == 0:
            best = cand
    return best


def block_pallas(x, params, *, num_heads, head_dim, scale, block_b=None):
    B, N, C = x.shape
    H, D = num_heads, head_dim
    HD = H * D
    HID = params["w_fc1"].shape[0]

    if block_b is None:
        block_b = _pick_block_b(B)
    assert B % block_b == 0, "block_b must divide B"

    # ---- host-side parameter folding -------------------------------------
    # softmax scale -> q rows of Wqkv and q_bias
    scale_vec = jnp.concatenate([jnp.full((HD,), scale, jnp.float32),
                                 jnp.ones((2 * HD,), jnp.float32)])
    wqkv_t = (params["w_qkv"] * scale_vec[:, None]).T                    # (C, 3HD)
    bias_qkv = jnp.concatenate([params["q_bias"],
                                jnp.zeros((HD,), jnp.float32),
                                params["v_bias"]]) * scale_vec            # (3HD,)
    # LN1 affine folded into Wqkv / its bias
    wqkv_eff = params["ln1_g"][:, None] * wqkv_t                          # (C, 3HD)
    bqkv_eff = params["ln1_b"] @ wqkv_t + bias_qkv                        # (3HD,)
    # gamma_1 folded into proj weight (split per head) / bias
    wproj_t = params["w_proj"].T                                          # (HD, C)
    wproj_eff = (wproj_t * params["gamma_1"][None, :]).reshape(H, D, C)   # (H, D, C)
    bproj_eff = params["b_proj"] * params["gamma_1"]                      # (C,)
    # LN2 affine folded into fc1
    wfc1_t = params["w_fc1"].T                                            # (C, HID)
    wfc1_eff = params["ln2_g"][:, None] * wfc1_t
    bfc1_eff = params["ln2_b"] @ wfc1_t + params["b_fc1"]                 # (HID,)
    # gamma_2 folded into fc2
    wfc2_eff = params["w_fc2"].T * params["gamma_2"][None, :]             # (HID, C)
    bfc2_eff = params["b_fc2"] * params["gamma_2"]                        # (C,)

    # pack the 4 remaining bias rows into one lane-aligned slab -> one DMA
    slab_w = ((max(3 * HD, C, HID) + 127) // 128) * 128
    def _row(v):
        v = v.reshape(-1).astype(jnp.float32)
        return jnp.pad(v, (0, slab_w - v.shape[0]))
    vec_slab = jnp.stack(
        [_row(bqkv_eff), _row(bproj_eff), _row(bfc1_eff), _row(bfc2_eff)]
        + [jnp.zeros((slab_w,), jnp.float32)] * 4, axis=0)                # (8, slab_w)

    relb = params["rel_bias"]                                             # (H, N, N)
    # TODO(synk): optional external `rel_pos_bias` forward arg not plumbed — add it
    # into `relb` host-side if needed.

    # ---- cost estimate (advisory) -----------------------------------------
    flops_per_b = (2 * N * C * 3 * HD                       # qkv
                   + H * (4 * N * N * D + 2 * N * D * C)    # qk^T, pv, per-head proj
                   + 2 * N * C * HID + 2 * N * HID * C)     # mlp
    cost = pl.CostEstimate(
        flops=B * flops_per_b,
        transcendentals=B * (H * N * N + N * HID + H * N + 2 * N),
        bytes_accessed=4 * (2 * B * N * C + C * 3 * HD + 8 * slab_w
                            + H * N * N + HD * C + C * HID + HID * C))

    def cspec(shape):
        zeros = (0,) * len(shape)
        return pl.BlockSpec(shape, lambda i, _z=zeros: _z)

    x_spec = pl.BlockSpec((block_b, N, C), lambda i: (i, 0, 0))

    return pl.pallas_call(
        _block_kernel,
        out_shape=jax.ShapeDtypeStruct((B, N, C), jnp.float32),
        grid_spec=pltpu.PrefetchScalarGridSpec(
            num_scalar_prefetch=0,
            grid=(B // block_b,),
            in_specs=[
                x_spec,                        # x
                cspec((C, 3 * HD)),            # qkv weight (T, LN1+scale folded)
                cspec((8, slab_w)),            # packed bias slab (qkv/proj/fc1/fc2 rows)
                cspec((H, N, N)),              # relative position bias
                cspec((H, D, C)),              # proj weight per head (gamma_1 folded)
                cspec((C, HID)),               # fc1 weight (T, LN2 folded)
                cspec((HID, C)),               # fc2 weight (T, gamma_2 folded)
            ],
            out_specs=x_spec,
        ),
        compiler_params=pltpu.CompilerParams(
            dimension_semantics=("parallel",)),   # keep >=2 parallel steps for v7x's 2 TCs
        input_output_aliases={0: 0},              # out aliases x (free when x is donated)
        cost_estimate=cost,
    )(x, wqkv_eff, vec_slab, relb, wproj_eff, wfc1_eff, wfc2_eff)


# ----------------------------------------------------------------------------
# Pure-JAX reference (mirrors the PyTorch Block.forward, eval mode)
# ----------------------------------------------------------------------------
def block_ref(x, params, *, num_heads, head_dim, scale):
    B, N, C = x.shape
    H, D = num_heads, head_dim
    HD = H * D

    def ln(v, g, b, eps=1e-5):
        mu = jnp.mean(v, axis=-1, keepdims=True)
        var = jnp.mean((v - mu) ** 2, axis=-1, keepdims=True)
        return (v - mu) / jnp.sqrt(var + eps) * g + b

    # --- attention branch ---
    y = ln(x, params["ln1_g"], params["ln1_b"])
    qkv_bias = jnp.concatenate([params["q_bias"],
                                jnp.zeros_like(params["v_bias"]),
                                params["v_bias"]])
    qkv = y @ params["w_qkv"].T + qkv_bias
    qkv = qkv.reshape(B, N, 3, H, D).transpose(2, 0, 3, 1, 4)
    q, k, v = qkv[0], qkv[1], qkv[2]
    q = q * scale
    attn = q @ jnp.swapaxes(k, -2, -1) + params["rel_bias"][None]
    attn = jax.nn.softmax(attn, axis=-1)
    out = (attn @ v).transpose(0, 2, 1, 3).reshape(B, N, HD)
    out = out @ params["w_proj"].T + params["b_proj"]
    x = x + params["gamma_1"] * out

    # --- mlp branch (exact erf GELU, as nn.GELU default) ---
    y2 = ln(x, params["ln2_g"], params["ln2_b"])
    h = y2 @ params["w_fc1"].T + params["b_fc1"]
    h = 0.5 * h * (1.0 + lax.erf(h * 0.7071067811865476))
    m = h @ params["w_fc2"].T + params["b_fc2"]
    return x + params["gamma_2"] * m


if __name__ == "__main__":
    # Small config consistent with the module:
    #   dim=32, num_heads=4 -> head_dim=8, window_size=(4,4) -> N = 4*4 + 1 = 17
    #   mlp_ratio=4 -> hidden=128, init_values=0.1 -> gamma_1/gamma_2 present
    dim, num_heads = 32, 4
    head_dim = dim // num_heads
    all_head_dim = head_dim * num_heads
    mlp_hidden = int(dim * 4.0)
    window_size = (4, 4)
    B = 2
    N = window_size[0] * window_size[1] + 1
    scale = head_dim ** (-0.5)
    init_values = 0.1

    key = jax.random.PRNGKey(0)
    ks = jax.random.split(key, 15)

    x = jax.random.normal(ks[0], (B, N, dim), dtype=jnp.float32)

    params = dict(
        w_qkv=0.02 * jax.random.normal(ks[1], (all_head_dim * 3, dim), jnp.float32),
        q_bias=0.02 * jax.random.normal(ks[2], (all_head_dim,), jnp.float32),
        v_bias=0.02 * jax.random.normal(ks[3], (all_head_dim,), jnp.float32),
        w_proj=0.02 * jax.random.normal(ks[4], (dim, all_head_dim), jnp.float32),
        b_proj=0.02 * jax.random.normal(ks[5], (dim,), jnp.float32),
        ln1_g=1.0 + 0.02 * jax.random.normal(ks[6], (dim,), jnp.float32),
        ln1_b=0.02 * jax.random.normal(ks[7], (dim,), jnp.float32),
        ln2_g=1.0 + 0.02 * jax.random.normal(ks[8], (dim,), jnp.float32),
        ln2_b=0.02 * jax.random.normal(ks[9], (dim,), jnp.float32),
        w_fc1=0.02 * jax.random.normal(ks[10], (mlp_hidden, dim), jnp.float32),
        b_fc1=0.02 * jax.random.normal(ks[11], (mlp_hidden,), jnp.float32),
        w_fc2=0.02 * jax.random.normal(ks[12], (dim, mlp_hidden), jnp.float32),
        b_fc2=0.02 * jax.random.normal(ks[13], (dim,), jnp.float32),
        gamma_1=jnp.full((dim,), init_values, jnp.float32),
        gamma_2=jnp.full((dim,), init_values, jnp.float32),
    )

    # Gather relative position bias table -> (num_heads, N, N)  (glue, plain JAX)
    rel_table = 0.02 * jax.random.normal(
        ks[14], ((2 * window_size[0] - 1) * (2 * window_size[1] - 1) + 3, num_heads),
        jnp.float32)
    rpi, _ = make_relative_position_index(window_size)
    rel_bias = rel_table[jnp.asarray(rpi.reshape(-1))].reshape(N, N, num_heads)
    params["rel_bias"] = jnp.transpose(rel_bias, (2, 0, 1)).astype(jnp.float32)

    # Reference first (x is aliased to the kernel output; keep its value untouched
    # conceptually — JAX copies the non-donated arg, but order it safely anyway).
    ref = block_ref(x, params, num_heads=num_heads, head_dim=head_dim, scale=scale)
    ref = jax.block_until_ready(ref)

    out = block_pallas(x, params, num_heads=num_heads, head_dim=head_dim, scale=scale)
    out = jax.block_until_ready(out)

    assert out.shape == (B, N, dim)
    # Tolerance accounts for TPU f32 matmul rounding, the host-side weight folding
    # reordering, and the EUP approximate reciprocal in the softmax.
    ok = np.allclose(np.asarray(out), np.asarray(ref), atol=1e-3, rtol=1e-3)
    assert ok, "Pallas Block output mismatch vs reference"

    print("KERNEL_OK")
</pallas_src>

<mosaic_0001>
module attributes {stable_mosaic.version = 11 : i64} {
  func.func @_block_kernel(%arg0: i32, %arg1: memref<1x17x32xf32, #tpu.memory_space<vmem>>, %arg2: memref<32x96xf32, #tpu.memory_space<vmem>>, %arg3: memref<8x128xf32, #tpu.memory_space<vmem>>, %arg4: memref<4x17x17xf32, #tpu.memory_space<vmem>>, %arg5: memref<4x8x32xf32, #tpu.memory_space<vmem>>, %arg6: memref<32x128xf32, #tpu.memory_space<vmem>>, %arg7: memref<128x32xf32, #tpu.memory_space<vmem>>, %arg8: memref<1x17x32xf32, #tpu.memory_space<vmem>>) attributes {dimension_semantics = [#tpu.dimension_semantics<parallel>], iteration_bounds = array<i64: 2>, scalar_prefetch = 0 : i64, scratch_operands = 0 : i64, tpu.core_type = #tpu.core_type<tc>, window_params = [{transform_indices = @transform_0, window_bounds = array<i64: 1, 17, 32>}, {pipeline_mode = #tpu.pipeline_mode<synchronous>, transform_indices = @transform_1, window_bounds = array<i64: 32, 96>}, {pipeline_mode = #tpu.pipeline_mode<synchronous>, transform_indices = @transform_2, window_bounds = array<i64: 8, 128>}, {pipeline_mode = #tpu.pipeline_mode<synchronous>, transform_indices = @transform_3, window_bounds = array<i64: 4, 17, 17>}, {pipeline_mode = #tpu.pipeline_mode<synchronous>, transform_indices = @transform_4, window_bounds = array<i64: 4, 8, 32>}, {pipeline_mode = #tpu.pipeline_mode<synchronous>, transform_indices = @transform_5, window_bounds = array<i64: 32, 128>}, {pipeline_mode = #tpu.pipeline_mode<synchronous>, transform_indices = @transform_6, window_bounds = array<i64: 128, 32>}, {transform_indices = @transform_7, window_bounds = array<i64: 1, 17, 32>}]} {
    %c0 = arith.constant 0 : index
    %c0_0 = arith.constant 0 : index
    %c0_1 = arith.constant 0 : index
    %0 = vector.load %arg1[%c0, %c0_0, %c0_1] : memref<1x17x32xf32, #tpu.memory_space<vmem>>, vector<1x17x32xf32>
    %1 = vector.shape_cast %0 : vector<1x17x32xf32> to vector<17x32xf32>
    %cst = arith.constant dense<0.000000e+00> : vector<17xf32>
    %2 = vector.multi_reduction <add>, %1, %cst [1] : vector<17x32xf32> to vector<17xf32>
    %3 = vector.shape_cast %2 : vector<17xf32> to vector<17x1xf32>
    %cst_2 = arith.constant 3.200000e+01 : f32
    %4 = vector.broadcast %cst_2 : f32 to vector<17x1xf32>
    %5 = arith.divf %3, %4 : vector<17x1xf32>
    %6 = vector.broadcast %5 : vector<17x1xf32> to vector<17x32xf32>
    %7 = arith.subf %1, %6 : vector<17x32xf32>
    %8 = arith.mulf %7, %7 : vector<17x32xf32>
    %cst_3 = arith.constant dense<0.000000e+00> : vector<17xf32>
    %9 = vector.multi_reduction <add>, %8, %cst_3 [1] : vector<17x32xf32> to vector<17xf32>
    %10 = vector.shape_cast %9 : vector<17xf32> to vector<17x1xf32>
    %cst_4 = arith.constant 3.200000e+01 : f32
    %11 = vector.broadcast %cst_4 : f32 to vector<17x1xf32>
    %12 = arith.divf %10, %11 : vector<17x1xf32>
    %cst_5 = arith.constant 9.99999974E-6 : f32
    %13 = vector.broadcast %cst_5 : f32 to vector<17x1xf32>
    %14 = arith.addf %12, %13 : vector<17x1xf32>
    %15 = math.rsqrt %14 : vector<17x1xf32>
    %16 = vector.broadcast %15 : vector<17x1xf32> to vector<17x32xf32>
    %17 = arith.mulf %7, %16 : vector<17x32xf32>
    %c0_6 = arith.constant 0 : index
    %c0_7 = arith.constant 0 : index
    %18 = vector.load %arg2[%c0_6, %c0_7] : memref<32x96xf32, #tpu.memory_space<vmem>>, vector<32x96xf32>
    %cst_8 = arith.constant dense<0.000000e+00> : vector<17x96xf32>
    %19 = tpu.matmul %17, %18, %cst_8 {dimension_numbers = #tpu.dot_dimension_numbers<[1], [0], [0], [1], [0, 0, 1, 1], [], []>} : vector<17x32xf32>, vector<32x96xf32>, vector<17x96xf32> -> vector<17x96xf32>
    %c0_9 = arith.constant 0 : index
    %c0_10 = arith.constant 0 : index
    %20 = vector.load %arg3[%c0_9, %c0_10] : memref<8x128xf32, #tpu.memory_space<vmem>>, vector<1x96xf32>
    %21 = vector.broadcast %20 : vector<1x96xf32> to vector<17x96xf32>
    %22 = arith.addf %19, %21 : vector<17x96xf32>
    %23 = vector.extract_strided_slice %22 {offsets = [0, 0], sizes = [17, 8], strides = [1, 1]} : vector<17x96xf32> to vector<17x8xf32>
    %24 = vector.extract_strided_slice %22 {offsets = [0, 32], sizes = [17, 8], strides = [1, 1]} : vector<17x96xf32> to vector<17x8xf32>
    %25 = vector.extract_strided_slice %22 {offsets = [0, 64], sizes = [17, 8], strides = [1, 1]} : vector<17x96xf32> to vector<17x8xf32>
    %cst_11 = arith.constant dense<0.000000e+00> : vector<17x17xf32>
    %26 = tpu.matmul %23, %24, %cst_11 {dimension_numbers = #tpu.dot_dimension_numbers<[1], [1], [0], [0], [0, 0, 1, 0], [], []>} : vector<17x8xf32>, vector<17x8xf32>, vector<17x17xf32> -> vector<17x17xf32>
    %c0_12 = arith.constant 0 : index
    %c0_13 = arith.constant 0 : index
    %c0_14 = arith.constant 0 : index
    %27 = vector.load %arg4[%c0_12, %c0_13, %c0_14] : memref<4x17x17xf32, #tpu.memory_space<vmem>>, vector<1x17x17xf32>
    %28 = vector.shape_cast %27 : vector<1x17x17xf32> to vector<17x17xf32>
    %29 = arith.addf %26, %28 : vector<17x17xf32>
    %cst_15 = arith.constant dense<0xFF800000> : vector<17xf32>
    %30 = vector.multi_reduction <maximumf>, %29, %cst_15 [1] : vector<17x17xf32> to vector<17xf32>
    %31 = vector.shape_cast %30 : vector<17xf32> to vector<17x1xf32>
    %32 = vector.broadcast %31 : vector<17x1xf32> to vector<17x17xf32>
    %33 = arith.subf %29, %32 : vector<17x17xf32>
    %34 = math.exp %33 : vector<17x17xf32>
    %cst_16 = arith.constant dense<0.000000e+00> : vector<17xf32>
    %35 = vector.multi_reduction <add>, %34, %cst_16 [1] : vector<17x17xf32> to vector<17xf32>
    %36 = vector.shape_cast %35 : vector<17xf32> to vector<17x1xf32>
    %cst_17 = arith.constant dense<0.000000e+00> : vector<17x8xf32>
    %37 = tpu.matmul %34, %25, %cst_17 {dimension_numbers = #tpu.dot_dimension_numbers<[1], [0], [0], [1], [0, 0, 1, 1], [], []>} : vector<17x17xf32>, vector<17x8xf32>, vector<17x8xf32> -> vector<17x8xf32>
    %38 = tpu.reciprocal %36 {approx = true} : vector<17x1xf32> -> vector<17x1xf32>
    %39 = vector.broadcast %38 : vector<17x1xf32> to vector<17x8xf32>
    %40 = arith.mulf %37, %39 : vector<17x8xf32>
    %c0_18 = arith.constant 0 : index
    %c0_19 = arith.constant 0 : index
    %c0_20 = arith.constant 0 : index
    %41 = vector.load %arg5[%c0_18, %c0_19, %c0_20] : memref<4x8x32xf32, #tpu.memory_space<vmem>>, vector<1x8x32xf32>
    %42 = vector.shape_cast %41 : vector<1x8x32xf32> to vector<8x32xf32>
    %cst_21 = arith.constant dense<0.000000e+00> : vector<17x32xf32>
    %43 = tpu.matmul %40, %42, %cst_21 {dimension_numbers = #tpu.dot_dimension_numbers<[1], [0], [0], [1], [0, 0, 1, 1], [], []>} : vector<17x8xf32>, vector<8x32xf32>, vector<17x32xf32> -> vector<17x32xf32>
    %44 = vector.extract_strided_slice %22 {offsets = [0, 8], sizes = [17, 8], strides = [1, 1]} : vector<17x96xf32> to vector<17x8xf32>
    %45 = vector.extract_strided_slice %22 {offsets = [0, 40], sizes = [17, 8], strides = [1, 1]} : vector<17x96xf32> to vector<17x8xf32>
    %46 = vector.extract_strided_slice %22 {offsets = [0, 72], sizes = [17, 8], strides = [1, 1]} : vector<17x96xf32> to vector<17x8xf32>
    %cst_22 = arith.constant dense<0.000000e+00> : vector<17x17xf32>
    %47 = tpu.matmul %44, %45, %cst_22 {dimension_numbers = #tpu.dot_dimension_numbers<[1], [1], [0], [0], [0, 0, 1, 0], [], []>} : vector<17x8xf32>, vector<17x8xf32>, vector<17x17xf32> -> vector<17x17xf32>
    %c1 = arith.constant 1 : index
    %c0_23 = arith.constant 0 : index
    %c0_24 = arith.constant 0 : index
    %48 = vector.load %arg4[%c1, %c0_23, %c0_24] : memref<4x17x17xf32, #tpu.memory_space<vmem>>, vector<1x17x17xf32>
    %49 = vector.shape_cast %48 : vector<1x17x17xf32> to vector<17x17xf32>
    %50 = arith.addf %47, %49 : vector<17x17xf32>
    %cst_25 = arith.constant dense<0xFF800000> : vector<17xf32>
    %51 = vector.multi_reduction <maximumf>, %50, %cst_25 [1] : vector<17x17xf32> to vector<17xf32>
    %52 = vector.shape_cast %51 : vector<17xf32> to vector<17x1xf32>
    %53 = vector.broadcast %52 : vector<17x1xf32> to vector<17x17xf32>
    %54 = arith.subf %50, %53 : vector<17x17xf32>
    %55 = math.exp %54 : vector<17x17xf32>
    %cst_26 = arith.constant dense<0.000000e+00> : vector<17xf32>
    %56 = vector.multi_reduction <add>, %55, %cst_26 [1] : vector<17x17xf32> to vector<17xf32>
    %57 = vector.shape_cast %56 : vector<17xf32> to vector<17x1xf32>
    %cst_27 = arith.constant dense<0.000000e+00> : vector<17x8xf32>
    %58 = tpu.matmul %55, %46, %cst_27 {dimension_numbers = #tpu.dot_dimension_numbers<[1], [0], [0], [1], [0, 0, 1, 1], [], []>} : vector<17x17xf32>, vector<17x8xf32>, vector<17x8xf32> -> vector<17x8xf32>
    %59 = tpu.reciprocal %57 {approx = true} : vector<17x1xf32> -> vector<17x1xf32>
    %60 = vector.broadcast %59 : vector<17x1xf32> to vector<17x8xf32>
    %61 = arith.mulf %58, %60 : vector<17x8xf32>
    %c1_28 = arith.constant 1 : index
    %c0_29 = arith.constant 0 : index
    %c0_30 = arith.constant 0 : index
    %62 = vector.load %arg5[%c1_28, %c0_29, %c0_30] : memref<4x8x32xf32, #tpu.memory_space<vmem>>, vector<1x8x32xf32>
    %63 = vector.shape_cast %62 : vector<1x8x32xf32> to vector<8x32xf32>
    %cst_31 = arith.constant dense<0.000000e+00> : vector<17x32xf32>
    %64 = tpu.matmul %61, %63, %cst_31 {dimension_numbers = #tpu.dot_dimension_numbers<[1], [0], [0], [1], [0, 0, 1, 1], [], []>} : vector<17x8xf32>, vector<8x32xf32>, vector<17x32xf32> -> vector<17x32xf32>
    %65 = arith.addf %43, %64 : vector<17x32xf32>
    %66 = vector.extract_strided_slice %22 {offsets = [0, 16], sizes = [17, 8], strides = [1, 1]} : vector<17x96xf32> to vector<17x8xf32>
    %67 = vector.extract_strided_slice %22 {offsets = [0, 48], sizes = [17, 8], strides = [1, 1]} : vector<17x96xf32> to vector<17x8xf32>
    %68 = vector.extract_strided_slice %22 {offsets = [0, 80], sizes = [17, 8], strides = [1, 1]} : vector<17x96xf32> to vector<17x8xf32>
    %cst_32 = arith.constant dense<0.000000e+00> : vector<17x17xf32>
    %69 = tpu.matmul %66, %67, %cst_32 {dimension_numbers = #tpu.dot_dimension_numbers<[1], [1], [0], [0], [0, 0, 1, 0], [], []>} : vector<17x8xf32>, vector<17x8xf32>, vector<17x17xf32> -> vector<17x17xf32>
    %c2 = arith.constant 2 : index
    %c0_33 = arith.constant 0 : index
    %c0_34 = arith.constant 0 : index
    %70 = vector.load %arg4[%c2, %c0_33, %c0_34] : memref<4x17x17xf32, #tpu.memory_space<vmem>>, vector<1x17x17xf32>
    %71 = vector.shape_cast %70 : vector<1x17x17xf32> to vector<17x17xf32>
    %72 = arith.addf %69, %71 : vector<17x17xf32>
    %cst_35 = arith.constant dense<0xFF800000> : vector<17xf32>
    %73 = vector.multi_reduction <maximumf>, %72, %cst_35 [1] : vector<17x17xf32> to vector<17xf32>
    %74 = vector.shape_cast %73 : vector<17xf32> to vector<17x1xf32>
    %75 = vector.broadcast %74 : vector<17x1xf32> to vector<17x17xf32>
    %76 = arith.subf %72, %75 : vector<17x17xf32>
    %77 = math.exp %76 : vector<17x17xf32>
    %cst_36 = arith.constant dense<0.000000e+00> : vector<17xf32>
    %78 = vector.multi_reduction <add>, %77, %cst_36 [1] : vector<17x17xf32> to vector<17xf32>
    %79 = vector.shape_cast %78 : vector<17xf32> to vector<17x1xf32>
    %cst_37 = arith.constant dense<0.000000e+00> : vector<17x8xf32>
    %80 = tpu.matmul %77, %68, %cst_37 {dimension_numbers = #tpu.dot_dimension_numbers<[1], [0], [0], [1], [0, 0, 1, 1], [], []>} : vector<17x17xf32>, vector<17x8xf32>, vector<17x8xf32> -> vector<17x8xf32>
    %81 = tpu.reciprocal %79 {approx = true} : vector<17x1xf32> -> vector<17x1xf32>
    %82 = vector.broadcast %81 : vector<17x1xf32> to vector<17x8xf32>
    %83 = arith.mulf %80, %82 : vector<17x8xf32>
    %c2_38 = arith.constant 2 : index
    %c0_39 = arith.constant 0 : index
    %c0_40 = arith.constant 0 : index
    %84 = vector.load %arg5[%c2_38, %c0_39, %c0_40] : memref<4x8x32xf32, #tpu.memory_space<vmem>>, vector<1x8x32xf32>
    %85 = vector.shape_cast %84 : vector<1x8x32xf32> to vector<8x32xf32>
    %cst_41 = arith.constant dense<0.000000e+00> : vector<17x32xf32>
    %86 = tpu.matmul %83, %85, %cst_41 {dimension_numbers = #tpu.dot_dimension_numbers<[1], [0], [0], [1], [0, 0, 1, 1], [], []>} : vector<17x8xf32>, vector<8x32xf32>, vector<17x32xf32> -> vector<17x32xf32>
    %87 = arith.addf %65, %86 : vector<17x32xf32>
    %88 = vector.extract_strided_slice %22 {offsets = [0, 24], sizes = [17, 8], strides = [1, 1]} : vector<17x96xf32> to vector<17x8xf32>
    %89 = vector.extract_strided_slice %22 {offsets = [0, 56], sizes = [17, 8], strides = [1, 1]} : vector<17x96xf32> to vector<17x8xf32>
    %90 = vector.extract_strided_slice %22 {offsets = [0, 88], sizes = [17, 8], strides = [1, 1]} : vector<17x96xf32> to vector<17x8xf32>
    %cst_42 = arith.constant dense<0.000000e+00> : vector<17x17xf32>
    %91 = tpu.matmul %88, %89, %cst_42 {dimension_numbers = #tpu.dot_dimension_numbers<[1], [1], [0], [0], [0, 0, 1, 0], [], []>} : vector<17x8xf32>, vector<17x8xf32>, vector<17x17xf32> -> vector<17x17xf32>
    %c3 = arith.constant 3 : index
    %c0_43 = arith.constant 0 : index
    %c0_44 = arith.constant 0 : index
    %92 = vector.load %arg4[%c3, %c0_43, %c0_44] : memref<4x17x17xf32, #tpu.memory_space<vmem>>, vector<1x17x17xf32>
    %93 = vector.shape_cast %92 : vector<1x17x17xf32> to vector<17x17xf32>
    %94 = arith.addf %91, %93 : vector<17x17xf32>
    %cst_45 = arith.constant dense<0xFF800000> : vector<17xf32>
    %95 = vector.multi_reduction <maximumf>, %94, %cst_45 [1] : vector<17x17xf32> to vector<17xf32>
    %96 = vector.shape_cast %95 : vector<17xf32> to vector<17x1xf32>
    %97 = vector.broadcast %96 : vector<17x1xf32> to vector<17x17xf32>
    %98 = arith.subf %94, %97 : vector<17x17xf32>
    %99 = math.exp %98 : vector<17x17xf32>
    %cst_46 = arith.constant dense<0.000000e+00> : vector<17xf32>
    %100 = vector.multi_reduction <add>, %99, %cst_46 [1] : vector<17x17xf32> to vector<17xf32>
    %101 = vector.shape_cast %100 : vector<17xf32> to vector<17x1xf32>
    %cst_47 = arith.constant dense<0.000000e+00> : vector<17x8xf32>
    %102 = tpu.matmul %99, %90, %cst_47 {dimension_numbers = #tpu.dot_dimension_numbers<[1], [0], [0], [1], [0, 0, 1, 1], [], []>} : vector<17x17xf32>, vector<17x8xf32>, vector<17x8xf32> -> vector<17x8xf32>
    %103 = tpu.reciprocal %101 {approx = true} : vector<17x1xf32> -> vector<17x1xf32>
    %104 = vector.broadcast %103 : vector<17x1xf32> to vector<17x8xf32>
    %105 = arith.mulf %102, %104 : vector<17x8xf32>
    %c3_48 = arith.constant 3 : index
    %c0_49 = arith.constant 0 : index
    %c0_50 = arith.constant 0 : index
    %106 = vector.load %arg5[%c3_48, %c0_49, %c0_50] : memref<4x8x32xf32, #tpu.memory_space<vmem>>, vector<1x8x32xf32>
    %107 = vector.shape_cast %106 : vector<1x8x32xf32> to vector<8x32xf32>
    %cst_51 = arith.constant dense<0.000000e+00> : vector<17x32xf32>
    %108 = tpu.matmul %105, %107, %cst_51 {dimension_numbers = #tpu.dot_dimension_numbers<[1], [0], [0], [1], [0, 0, 1, 1], [], []>} : vector<17x8xf32>, vector<8x32xf32>, vector<17x32xf32> -> vector<17x32xf32>
    %109 = arith.addf %87, %108 : vector<17x32xf32>
    %110 = arith.addf %1, %109 : vector<17x32xf32>
    %c1_52 = arith.constant 1 : index
    %c0_53 = arith.constant 0 : index
    %111 = vector.load %arg3[%c1_52, %c0_53] : memref<8x128xf32, #tpu.memory_space<vmem>>, vector<1x32xf32>
    %112 = vector.broadcast %111 : vector<1x32xf32> to vector<17x32xf32>
    %113 = arith.addf %110, %112 : vector<17x32xf32>
    %cst_54 = arith.constant dense<0.000000e+00> : vector<17xf32>
    %114 = vector.multi_reduction <add>, %113, %cst_54 [1] : vector<17x32xf32> to vector<17xf32>
    %115 = vector.shape_cast %114 : vector<17xf32> to vector<17x1xf32>
    %cst_55 = arith.constant 3.200000e+01 : f32
    %116 = vector.broadcast %cst_55 : f32 to vector<17x1xf32>
    %117 = arith.divf %115, %116 : vector<17x1xf32>
    %118 = vector.broadcast %117 : vector<17x1xf32> to vector<17x32xf32>
    %119 = arith.subf %113, %118 : vector<17x32xf32>
    %120 = arith.mulf %119, %119 : vector<17x32xf32>
    %cst_56 = arith.constant dense<0.000000e+00> : vector<17xf32>
    %121 = vector.multi_reduction <add>, %120, %cst_56 [1] : vector<17x32xf32> to vector<17xf32>
    %122 = vector.shape_cast %121 : vector<17xf32> to vector<17x1xf32>
    %cst_57 = arith.constant 3.200000e+01 : f32
    %123 = vector.broadcast %cst_57 : f32 to vector<17x1xf32>
    %124 = arith.divf %122, %123 : vector<17x1xf32>
    %cst_58 = arith.constant 9.99999974E-6 : f32
    %125 = vector.broadcast %cst_58 : f32 to vector<17x1xf32>
    %126 = arith.addf %124, %125 : vector<17x1xf32>
    %127 = math.rsqrt %126 : vector<17x1xf32>
    %128 = vector.broadcast %127 : vector<17x1xf32> to vector<17x32xf32>
    %129 = arith.mulf %119, %128 : vector<17x32xf32>
    %c0_59 = arith.constant 0 : index
    %c0_60 = arith.constant 0 : index
    %130 = vector.load %arg6[%c0_59, %c0_60] : memref<32x128xf32, #tpu.memory_space<vmem>>, vector<32x128xf32>
    %cst_61 = arith.constant dense<0.000000e+00> : vector<17x128xf32>
    %131 = tpu.matmul %129, %130, %cst_61 {dimension_numbers = #tpu.dot_dimension_numbers<[1], [0], [0], [1], [0, 0, 1, 1], [], []>} : vector<17x32xf32>, vector<32x128xf32>, vector<17x128xf32> -> vector<17x128xf32>
    %c2_62 = arith.constant 2 : index
    %c0_63 = arith.constant 0 : index
    %132 = vector.load %arg3[%c2_62, %c0_63] : memref<8x128xf32, #tpu.memory_space<vmem>>, vector<1x128xf32>
    %133 = vector.broadcast %132 : vector<1x128xf32> to vector<17x128xf32>
    %134 = arith.addf %131, %133 : vector<17x128xf32>
    %cst_64 = arith.constant 5.000000e-01 : f32
    %135 = vector.broadcast %cst_64 : f32 to vector<17x128xf32>
    %136 = arith.mulf %135, %134 : vector<17x128xf32>
    %cst_65 = arith.constant 0.707106769 : f32
    %137 = vector.broadcast %cst_65 : f32 to vector<17x128xf32>
    %138 = arith.mulf %134, %137 : vector<17x128xf32>
    %139 = math.absf %138 : vector<17x128xf32>
    %cst_66 = arith.constant 0.327591091 : f32
    %140 = vector.broadcast %cst_66 : f32 to vector<17x128xf32>
    %141 = arith.mulf %140, %139 : vector<17x128xf32>
    %cst_67 = arith.constant 1.000000e+00 : f32
    %142 = vector.broadcast %cst_67 : f32 to vector<17x128xf32>
    %143 = arith.addf %142, %141 : vector<17x128xf32>
    %cst_68 = arith.constant 1.000000e+00 : f32
    %144 = vector.broadcast %cst_68 : f32 to vector<17x128xf32>
    %145 = arith.divf %144, %143 : vector<17x128xf32>
    %cst_69 = arith.constant 1.06140542 : f32
    %146 = vector.broadcast %cst_69 : f32 to vector<17x128xf32>
    %147 = arith.mulf %145, %146 : vector<17x128xf32>
    %cst_70 = arith.constant -1.45315206 : f32
    %148 = vector.broadcast %cst_70 : f32 to vector<17x128xf32>
    %149 = arith.addf %148, %147 : vector<17x128xf32>
    %150 = arith.mulf %145, %149 : vector<17x128xf32>
    %cst_71 = arith.constant 1.42141378 : f32
    %151 = vector.broadcast %cst_71 : f32 to vector<17x128xf32>
    %152 = arith.addf %151, %150 : vector<17x128xf32>
    %153 = arith.mulf %145, %152 : vector<17x128xf32>
    %cst_72 = arith.constant -0.284496725 : f32
    %154 = vector.broadcast %cst_72 : f32 to vector<17x128xf32>
    %155 = arith.addf %154, %153 : vector<17x128xf32>
    %156 = arith.mulf %145, %155 : vector<17x128xf32>
    %cst_73 = arith.constant 0.254829586 : f32
    %157 = vector.broadcast %cst_73 : f32 to vector<17x128xf32>
    %158 = arith.addf %157, %156 : vector<17x128xf32>
    %159 = arith.mulf %145, %158 : vector<17x128xf32>
    %cst_74 = arith.constant 0.000000e+00 : f32
    %160 = vector.broadcast %cst_74 : f32 to vector<17x128xf32>
    %161 = arith.subf %160, %139 : vector<17x128xf32>
    %162 = arith.mulf %161, %139 : vector<17x128xf32>
    %163 = math.exp %162 : vector<17x128xf32>
    %164 = arith.mulf %159, %163 : vector<17x128xf32>
    %cst_75 = arith.constant 1.000000e+00 : f32
    %165 = vector.broadcast %cst_75 : f32 to vector<17x128xf32>
    %166 = arith.subf %165, %164 : vector<17x128xf32>
    %cst_76 = arith.constant 0.000000e+00 : f32
    %167 = vector.broadcast %cst_76 : f32 to vector<17x128xf32>
    %168 = arith.cmpf oge, %138, %167 : vector<17x128xf32>
    %cst_77 = arith.constant 0.000000e+00 : f32
    %169 = vector.broadcast %cst_77 : f32 to vector<17x128xf32>
    %170 = arith.subf %169, %166 : vector<17x128xf32>
    %171 = arith.select %168, %166, %170 : vector<17x128xi1>, vector<17x128xf32>
    %cst_78 = arith.constant 1.000000e+00 : f32
    %172 = vector.broadcast %cst_78 : f32 to vector<17x128xf32>
    %173 = arith.addf %172, %171 : vector<17x128xf32>
    %174 = arith.mulf %136, %173 : vector<17x128xf32>
    %c0_79 = arith.constant 0 : index
    %c0_80 = arith.constant 0 : index
    %175 = vector.load %arg7[%c0_79, %c0_80] : memref<128x32xf32, #tpu.memory_space<vmem>>, vector<128x32xf32>
    %cst_81 = arith.constant dense<0.000000e+00> : vector<17x32xf32>
    %176 = tpu.matmul %174, %175, %cst_81 {dimension_numbers = #tpu.dot_dimension_numbers<[1], [0], [0], [1], [0, 0, 1, 1], [], []>} : vector<17x128xf32>, vector<128x32xf32>, vector<17x32xf32> -> vector<17x32xf32>
    %c3_82 = arith.constant 3 : index
    %c0_83 = arith.constant 0 : index
    %177 = vector.load %arg3[%c3_82, %c0_83] : memref<8x128xf32, #tpu.memory_space<vmem>>, vector<1x32xf32>
    %178 = vector.broadcast %177 : vector<1x32xf32> to vector<17x32xf32>
    %179 = arith.addf %176, %178 : vector<17x32xf32>
    %180 = arith.addf %113, %179 : vector<17x32xf32>
    %181 = vector.shape_cast %180 : vector<17x32xf32> to vector<1x17x32xf32>
    %c0_84 = arith.constant 0 : index
    %c0_85 = arith.constant 0 : index
    %c0_86 = arith.constant 0 : index
    %182 = vector.load %arg8[%c0_84, %c0_85, %c0_86] : memref<1x17x32xf32, #tpu.memory_space<vmem>>, vector<1x17x32xf32>
    tpu.vector_store %arg8[%c0_84, %c0_85, %c0_86], %181 {strides = array<i32>} : memref<1x17x32xf32, #tpu.memory_space<vmem>>, vector<1x17x32xf32>,
    return
  }
  func.func @transform_0(%arg0: i32) -> (i32, i32, i32) {
    %c0_i32 = arith.constant 0 : i32
    %c0_i32_0 = arith.constant 0 : i32
    %c0_i32_1 = arith.constant 0 : i32
    return %arg0, %c0_i32, %c0_i32_0 : i32, i32, i32
  }
  func.func @transform_1(%arg0: i32) -> (i32, i32) {
    %c0_i32 = arith.constant 0 : i32
    %c0_i32_0 = arith.constant 0 : i32
    %c0_i32_1 = arith.constant 0 : i32
    return %c0_i32, %c0_i32_0 : i32, i32
  }
  func.func @transform_2(%arg0: i32) -> (i32, i32) {
    %c0_i32 = arith.constant 0 : i32
    %c0_i32_0 = arith.constant 0 : i32
    %c0_i32_1 = arith.constant 0 : i32
    return %c0_i32, %c0_i32_0 : i32, i32
  }
  func.func @transform_3(%arg0: i32) -> (i32, i32, i32) {
    %c0_i32 = arith.constant 0 : i32
    %c0_i32_0 = arith.constant 0 : i32
    %c0_i32_1 = arith.constant 0 : i32
    %c0_i32_2 = arith.constant 0 : i32
    return %c0_i32, %c0_i32_0, %c0_i32_1 : i32, i32, i32
  }
  func.func @transform_4(%arg0: i32) -> (i32, i32, i32) {
    %c0_i32 = arith.constant 0 : i32
    %c0_i32_0 = arith.constant 0 : i32
    %c0_i32_1 = arith.constant 0 : i32
    %c0_i32_2 = arith.constant 0 : i32
    return %c0_i32, %c0_i32_0, %c0_i32_1 : i32, i32, i32
  }
  func.func @transform_5(%arg0: i32) -> (i32, i32) {
    %c0_i32 = arith.constant 0 : i32
    %c0_i32_0 = arith.constant 0 : i32
    %c0_i32_1 = arith.constant 0 : i32
    return %c0_i32, %c0_i32_0 : i32, i32
  }
  func.func @transform_6(%arg0: i32) -> (i32, i32) {
    %c0_i32 = arith.constant 0 : i32
    %c0_i32_0 = arith.constant 0 : i32
    %c0_i32_1 = arith.constant 0 : i32
    return %c0_i32, %c0_i32_0 : i32, i32
  }
  func.func @transform_7(%arg0: i32) -> (i32, i32, i32) {
    %c0_i32 = arith.constant 0 : i32
    %c0_i32_0 = arith.constant 0 : i32
    %c0_i32_1 = arith.constant 0 : i32
    return %arg0, %c0_i32, %c0_i32_0 : i32, i32, i32
  }
}

</mosaic_0001>

<bundles_post_ra>
// kernel: tpu_custom_call.1
= control target key start
LH: loop header
LB: loop body
LE: loop exit
PB: predicated region body
PF: predicated region fallthrough
CT: control target
= control target key end

     0   :  { %s2825_s24 = smov 0   ;;  %s3307_s0 = inlined_call_operand.vmem [shape: f32[2,17,32], index: 0, kind: input, shape index: {}, may-alias: {0,7}]   ;;  %s3308_s1 = inlined_call_operand.vmem [shape: f32[32,96], index: 1, kind: input, shape index: {}]   ;;  %s3309_s2 = inlined_call_operand.vmem [shape: f32[8,128], index: 2, kind: input, shape index: {}]   ;;  %s3310_s3 = inlined_call_operand.vmem [shape: f32[4,17,17], index: 3, kind: input, shape index: {}]   ;;  %s3311_s4 = inlined_call_operand.vmem [shape: f32[4,8,32], index: 4, kind: input, shape index: {}]   ;;  %s3312_s5 = inlined_call_operand.vmem [shape: f32[32,128], index: 5, kind: input, shape index: {}]   ;;  %s3313_s6 = inlined_call_operand.vmem [shape: f32[128,32], index: 6, kind: input, shape index: {}]   ;;  %s3314_s7 = inlined_call_operand.vmem [shape: f32[2,17,32], index: 7, kind: output, shape index: {}, may-alias: {0,7}]  }
   0x1 LB: > { %s2142_s25 = sadd.s32 4294967295, %s2769_s24   ;;  %p2146_p0 = scmp.ge.s32.totalorder %s2769_s24, 1  ;;  %s2769_s24 = sphi %s2825_s24, %s17_s24  }
   0x2   : > { %p237_p1 = scmp.lt.s32.totalorder %s2769_s24, 3 }
   0x4   : > { %p238_p2 = pnand %p2146_p0, %p237_p1 }
   0x5   : > { %p269_p3 = scmp.lt.s32.totalorder (!%p238_p2), %s2142_s25, 1  ;;  %vm282_vm0 = vcmask (!%p238_p2), 261120   ;;  %vm289_vm1 = vcmask (!%p238_p2), 253952   ;;  %v324_v21 = vld [vmem:[%s3308_s1] sm:$0xff] (!%p238_p2)  ;;  %v325_v22 = vld [vmem:[%s3308_s1 + $0x8] sm:$0xff] (!%p238_p2)  ;;  %v326_v24 = vld [vmem:[%s3308_s1 + $0x10] sm:$0xff] (!%p238_p2) }
   0x6   : > { %241 = sbr.rel (%p238_p2) target bundleno = 3287 (0xcd7), region = 48  ;;  %v2562_v23 = vpack.c.bf16 (!%p238_p2), %v325_v22, %v324_v21  ;;  %v327_v25 = vld [vmem:[%s3308_s1 + $0x18] sm:$0xff] (!%p238_p2)  ;;  %v2771_v26 = vmov (!%p238_p2), 0.0|0.0   ;;  %vm2772_vm2 = vmmov (!%p238_p2), 0   ;;  %v2773_v27 = vmov (!%p238_p2), 0.0   ;;  %s2774_s17 = smov (!%p238_p2), 96  }
   0x7   : > { %2561 = vmatprep.subr.bf16.mxu1 (!%p238_p2), %v2771_v26  ;;  %2330 = vmatprep.mubr.msk.f32.mxu1 (!%p238_p2), %vm2772_vm2, %v2773_v27  ;;  %v2565_v28 = vpack.c.bf16 (!%p238_p2), %v327_v25, %v326_v24  ;;  %v2149_v46 = vld [vmem:[%s3309_s2] ss:$0 sm:$0xff] (!%p238_p2)  ;;  %s2775_s18 = smov (!%p238_p2), 120   ;;  %s2776_s19 = smov (!%p238_p2), 88   ;;  %vm434_vm3 = vcmask (!%p238_p2), 64512   ;;  %vm527_vm5 = vcmask (!%p238_p2), 138240  }
   0x8   : > { %2563 = vmatpush3.bf16.msra.mxu1 (!%p238_p2), %v2562_v23  ;;  %2571 = vmatprep.subr.bf16.mxu0 (!%p238_p2), %v2771_v26  ;;  %s2777_s20 = smov (!%p238_p2), 64   ;;  %vm2905_vm4 = vmpackc.low (!%p238_p2), %vm434_vm3, %vm434_vm3  ;;  %vm534_vm6 = vcmask (!%p238_p2), 131072   ;;  %v2163_v23 = vld [vmem:[%s3310_s3 + $0x18] sm:$0xff] (!%p238_p2)  ;;  %s2778_s14 = smov (!%p238_p2), 56   ;;  %vm573_vm7 = vcmask (!%p238_p2), 1040384  }
   0x9   : > { %2564 = vmatprep.subr.bf16.mxu1 (!%p238_p2), %v2771_v26  ;;  %2360 = vmatprep.mubr.msk.f32.mxu0 (!%p238_p2), %vm2772_vm2, %v2773_v27  ;;  %s2779_s15 = smov (!%p238_p2), 80   ;;  %s2780_s16 = smov (!%p238_p2), 112  }
   0xa   : > { %s2782_s9 = smov (!%p238_p2), 72   ;;  %s2783_s10 = smov (!%p238_p2), 104  }
   0xc   : > { %2566 = vmatpush3.bf16.msra.mxu1 (!%p238_p2), %v2565_v28 }
   0xd   : > { %s3318_s25 = smov (!%p269_p3, %s2142_s25), 1  ;;  %2567 = vmatprep.subr.bf16.mxu1 %v2771_v26 }
   0xe   : > { %s2625_s26 = smul.u32 24, %s3318_s25 }
  0x10   : > { %s2841_s29 = scalar_lea.vmem %s3307_s0, %s2625_s26 }
  0x11   : > { %v279_v0 = vld [vmem:[%s2841_s29] sm:$0xff]  ;;  %v281_v1 = vld [vmem:[%s2841_s29 + $0x10] sm:$0x1]  ;;  %v280_v2 = vld [vmem:[%s2841_s29 + $0x8] sm:$0xff] }
  0x12   : > { %v283_v3 = vsel %vm282_vm0, %v279_v0, 0.0  ;;  %v290_v4 = vsel %vm289_vm1, %v281_v1, 0.0  ;;  %v286_v5 = vsel %vm282_vm0, %v280_v2, 0.0 }
  0x13   : > { %284 = vadd.xlane.f32.xlu0 %v283_v3  ;;  %291 = vadd.xlane.f32.xlu1 %v290_v4 }
  0x17   : > { %287 = vadd.xlane.f32.xlu0 %v286_v5 }
  0xa0   : > { %v285_v6 = vpop.xlane.xlu0 %284  ;;  %v292_v7 = vpop.xlane.xlu1 %291 }
  0xa1   : > { %v294_v8 = vmul.f32 0.03125, %v285_v6  ;;  %v296_v9 = vmul.f32 0.03125, %v292_v7 }
  0xa3   : > { %v297_v10 = vsub.f32 %v279_v0, %v294_v8  ;;  %v299_v11 = vsub.f32 %v281_v1, %v296_v9  ;;  %v422_v9 = vld [vmem:[%s3310_s3] sm:$0xff] }
  0xa4   : > { %v288_v12 = vpop.xlane.xlu0 %287 }
  0xa5   : > { %v295_v13 = vmul.f32 0.03125, %v288_v12  ;;  %v300_v14 = vmul.f32 %v297_v10, %v297_v10  ;;  %v302_v15 = vmul.f32 %v299_v11, %v299_v11 }
  0xa7   : > { %v298_v16 = vsub.f32 %v280_v2, %v295_v13  ;;  %v303_v17 = vsel %vm282_vm0, %v300_v14, 0.0  ;;  %v309_v18 = vsel %vm289_vm1, %v302_v15, 0.0  ;;  %v423_v13 = vld [vmem:[%s3310_s3 + $0x8] sm:$0xff] }
  0xa8   : > { %304 = vadd.xlane.f32.xlu1 %v303_v17 }
  0xa9   : > { %v301_v19 = vmul.f32 %v298_v16, %v298_v16 }
  0xab   : > { %v306_v20 = vsel %vm282_vm0, %v301_v19, 0.0 }
  0xac   : > { %310 = vadd.xlane.f32.xlu1 %v309_v18  ;;  %307 = vadd.xlane.f32.xlu0 %v306_v20  ;;  %v424_v18 = vld [vmem:[%s3310_s3 + $0x10] sm:$0x1] }
 0x135   : > { %v305_v29 = vpop.xlane.xlu1 %304 }
 0x136   : > { %v312_v30 = vmul.f32 0.03125, %v305_v29 }
 0x138   : > { %v315_v31 = vadd.f32 1e-05, %v312_v30  ;;  %v2164_v30 = vld [vmem:[%s3310_s3 + $0x20] sm:$0xff] }
 0x139   : > { %v311_v32 = vpop.xlane.xlu1 %310  ;;  %v308_v33 = vpop.xlane.xlu0 %307 }
 0x13a   : > { %2688 = vrsqrt.f32 %v315_v31  ;;  %v314_v34 = vmul.f32 0.03125, %v311_v32  ;;  %v313_v35 = vmul.f32 0.03125, %v308_v33 }
 0x13c   : > { %v316_v36 = vadd.f32 1e-05, %v313_v35  ;;  %v317_v37 = vadd.f32 1e-05, %v314_v34  ;;  %v2165_v35 = vld [vmem:[%s3310_s3 + $0x28] sm:$0x1] }
 0x13e   : > { %2690 = vrsqrt.f32 %v316_v36 }
 0x13f   : > { %2692 = vrsqrt.f32 %v317_v37 }
 0x144   : > { %v2689_v38 = vpop.eup %2688 }
 0x145   : > { %v321_v39 = vmul.f32 %v2689_v38, %v297_v10 }
 0x147   : > { %2331 = vmatmul.mubr.msk.f32.vlgmr.msra.gmra.mrb[0].mxu1 %vm282_vm0, %v321_v39 }
 0x148   : > { %2333 = vmatprep.mubr.msk.f32.mxu1 %vm2772_vm2, %v2773_v27  ;;  %v2691_v40 = vpop.eup %2690 }
 0x149   : > { %v322_v41 = vmul.f32 %v2691_v40, %v298_v16  ;;  %v2693_v42 = vpop.eup %2692 }
 0x14a   : > { %v323_v43 = vmul.f32 %v2693_v42, %v299_v11 }
 0x14b   : > { %2334 = vmatmul.mubr.msk.f32.gmra.mrb[2].mxu1 %vm282_vm0, %v322_v41 }
 0x14c   : > { %2336 = vmatprep.mubr.msk.f32.mxu1 %vm2772_vm2, %v2773_v27 }
 0x14f   : > { %2337 = vmatmul.mubr.msk.f32.gmra.mrb[4].mxu1 %vm282_vm0, %v323_v43 }
 0x150   : > { %2345 = vmatprep.mubr.msk.f32.mxu1 %vm2772_vm2, %v2773_v27 }
 0x21a   : > { %v408_v44 = vpop.f32.mrb[0].mxu1 }
 0x21b   : > { %v2332_v45 = vpop.f32.mrb[1].mxu1  ;;  %v2884_v48 = vadd.f32 %v2149_v46, %v408_v44 }
 0x21e   : > { %v413_v47 = vpop.f32.mrb[2].mxu1 }
 0x21f   : > { %v2886_v49 = vadd.f32 %v2149_v46, %v413_v47  ;;  %v2335_v50 = vpop.f32.mrb[3].mxu1 }
 0x221   : > { %v2890_v51 = vpack.i.bf16 %v2886_v49, %v2884_v48 }
 0x222   : > { %v418_v52 = vpop.f32.mrb[4].mxu1 }
 0x223   : > { %v2892_v53 = vadd.f32 %v2149_v46, %v418_v52  ;;  %2649 = vrot.lane.b32.xlu0 %v2890_v51, %s2774_s17  ;;  %v2338_v54 = vpop.f32.mrb[5].mxu1 }
 0x225   : > { %432 = vrot.lane.b32.xlu1 %v2892_v53, %s2774_s17  ;;  %s2781_s17 = smov 48  }
 0x227   : > { %667 = vrot.lane.b32.xlu0 %v2884_v48, %s2775_s18 }
 0x229   : > { %2654 = vrot.lane.b32.xlu1 %v2890_v51, %s2776_s19 }
 0x22b   : > { %671 = vrot.lane.b32.xlu0 %v2892_v53, %s2775_s18 }
 0x22d   : > { %677 = vrot.lane.b32.xlu1 %v2892_v53, %s2776_s19  ;;  %s2784_s19 = smov 40  }
 0x231   : > { %669 = vrot.lane.b32.xlu1 %v2886_v49, %s2775_s18 }
 0x235   : > { %2659 = vrot.lane.b32.xlu1 %v2890_v51, %s2777_s20 }
 0x295   : > { %v2650_v55 = vpop.permute.xlu0 %2649 }
 0x296   : > { %v2652_v56 = vunpack.i.h.bf16 %v2650_v55  ;;  %v2651_v57 = vunpack.i.l.bf16 %v2650_v55 }
 0x297   : > { %v433_v58 = vpop.permute.xlu1 %432 }
 0x298   : > { %v2568_v60 = vpack.c.bf16 %v2652_v56, %v2651_v57 }
 0x299   : > { %v668_v7 = vpop.permute.xlu0 %667 }
 0x29a   : > { %2570 = vmatpush3.bf16.xpose.msk.msra.mxu1 %vm2905_vm4, %v2568_v60 }
 0x29b   : > { %v2655_v61 = vpop.permute.xlu1 %2654  ;;  %2343 = vmatprep.subr.mxu1 %v2773_v27 }
 0x29c   : > { %v2657_v63 = vunpack.i.h.bf16 %v2655_v61  ;;  %v2656_v0 = vunpack.i.l.bf16 %v2655_v61 }
 0x29d   : > { %v672_v8 = vpop.permute.xlu0 %671 }
 0x29e   : > { %v2575_v2 = vpack.c.bf16 %v2657_v63, %v2656_v0 }
 0x29f   : > { %v678_v62 = vpop.permute.xlu1 %677 }
 0x2a2   : > { %2344 = vmatpush3.xpose.msk.msra.mxu1 %vm434_vm3, %v433_v58 }
 0x2a3   : > { %v670_v1 = vpop.permute.xlu1 %669  ;;  %2574 = vmatprep.subr.bf16.mxu1 %v2771_v26 }
 0x2a5   : > { %2346 = vmatmul.mubr.msk.f32.vlgmr.msra.gmra.mrb[6].mxu1 %vm434_vm3, %v2884_v48 }
 0x2a6   : > { %2577 = vmatpush3.bf16.xpose.msk.msra.mxu1 %vm2905_vm4, %v2575_v2  ;;  %2348 = vmatprep.mubr.msk.f32.mxu1 %vm2772_vm2, %v2773_v27 }
 0x2a7   : > { %v2660_v3 = vpop.permute.xlu1 %2659  ;;  %2373 = vmatprep.subr.mxu1 %v2773_v27 }
 0x2a8   : > { %v2662_v4 = vunpack.i.h.bf16 %v2660_v3  ;;  %v2661_v5 = vunpack.i.l.bf16 %v2660_v3 }
 0x2a9   : > { %2349 = vmatmul.mubr.msk.f32.gmra.mrb[8].mxu1 %vm434_vm3, %v2886_v49 }
 0x2aa   : > { %2351 = vmatprep.mubr.msk.f32.mxu1 %vm2772_vm2, %v2773_v27  ;;  %v2572_v6 = vpack.c.bf16 %v2662_v4, %v2661_v5 }
 0x2ac   : > { %2573 = vmatpush3.bf16.msra.mxu0 %v2572_v6 }
 0x2ad   : > { %2352 = vmatmul.mubr.msk.f32.gmra.mrb[10].mxu1 %vm434_vm3, %v2892_v53  ;;  %2358 = vmatprep.subr.mxu0 %v2773_v27 }
 0x2ae   : > { %2374 = vmatpush3.xpose.msk.msra.mxu1 %vm434_vm3, %v678_v62  ;;  %2375 = vmatprep.mubr.msk.f32.mxu1 %vm2772_vm2, %v2773_v27 }
 0x2af   : > { %2399 = vmatprep.subr.mxu1 %v2773_v27 }
 0x2b1   : > { %2376 = vmatmul.mubr.msk.f32.vlgmr.msra.gmra.mrb[12].mxu1 %vm434_vm3, %v668_v7 }
 0x2b2   : > { %2378 = vmatprep.mubr.msk.f32.mxu1 %vm2772_vm2, %v2773_v27 }
 0x2b5   : > { %2379 = vmatmul.mubr.msk.f32.gmra.mrb[14].mxu1 %vm434_vm3, %v670_v1 }
 0x2b6   : > { %2381 = vmatprep.mubr.msk.f32.mxu1 %vm2772_vm2, %v2773_v27 }
 0x2b9   : > { %2382 = vmatmul.mubr.msk.f32.gmra.mrb[16].mxu1 %vm434_vm3, %v672_v8 }
 0x2ba   : > { %2401 = vmatprep.mubr.msk.f32.mxu1 %vm2772_vm2, %v2773_v27 }
 0x378   : > { %v513_v10 = vpop.f32.mrb[6].mxu1 }
 0x379   : > { %v514_v11 = vadd.f32 %v513_v10, %v422_v9  ;;  %v2347_v12 = vpop.f32.mrb[7].mxu1 }
 0x37b   : > { %v528_v14 = vsel %vm527_vm5, %v514_v11, -inf }
 0x37c   : > { %529 = vmax.xlane.f32.xlu1 %v528_v14  ;;  %v518_v15 = vpop.f32.mrb[8].mxu1 }
 0x37d   : > { %v519_v16 = vadd.f32 %v518_v15, %v423_v13  ;;  %v2350_v17 = vpop.f32.mrb[9].mxu1 }
 0x37f   : > { %v531_v19 = vsel %vm527_vm5, %v519_v16, -inf }
 0x380   : > { %532 = vmax.xlane.f32.xlu0 %v531_v19  ;;  %v523_v20 = vpop.f32.mrb[10].mxu1  ;;  %v2176_v19 = vld [vmem:[%s3311_s4 + $0x8] sm:$0xff] }
 0x381   : > { %v524_v21 = vadd.f32 %v523_v20, %v424_v18  ;;  %v2353_v22 = vpop.f32.mrb[11].mxu1  ;;  %v662_v18 = vld [vmem:[%s3311_s4] sm:$0xff]  ;;  %2400 = vmatpush3.msra.mxu1 %v2176_v19 }
 0x382   : > { %2581 = vmatprep.subr.bf16.mxu1 %v2771_v26 }
 0x383   : > { %v535_v24 = vsel %vm534_vm6, %v524_v21, -inf }
 0x384   : > { %536 = vmax.xlane.f32.xlu0 %v535_v24  ;;  %v757_v25 = vpop.f32.mrb[12].mxu1 }
 0x385   : > { %v758_v28 = vadd.f32 %v2163_v23, %v757_v25  ;;  %v2377_v29 = vpop.f32.mrb[13].mxu1 }
 0x387   : > { %v771_v31 = vsel %vm527_vm5, %v758_v28, -inf }
 0x388   : > { %772 = vmax.xlane.f32.xlu0 %v771_v31  ;;  %v762_v32 = vpop.f32.mrb[14].mxu1 }
 0x389   : > { %v763_v33 = vadd.f32 %v2164_v30, %v762_v32  ;;  %v2380_v34 = vpop.f32.mrb[15].mxu1 }
 0x38b   : > { %v774_v36 = vsel %vm527_vm5, %v763_v33, -inf }
 0x38c   : > { %775 = vmax.xlane.f32.xlu1 %v774_v36  ;;  %v767_v37 = vpop.f32.mrb[16].mxu1 }
 0x38d   : > { %v768_v38 = vadd.f32 %v2165_v35, %v767_v37  ;;  %v2383_v39 = vpop.f32.mrb[17].mxu1 }
 0x38f   : > { %v777_v40 = vsel %vm534_vm6, %v768_v38, -inf }
 0x390   : > { %778 = vmax.xlane.f32.xlu0 %v777_v40 }
 0x39d   : > { %2664 = vrot.lane.b32.xlu1 %v2890_v51, %s2778_s14 }
 0x3a1   : > { %802 = vrot.lane.b32.xlu1 %v2892_v53, %s2778_s14 }
 0x3a6   : > { %560 = vrot.lane.b32.xlu0 %v2892_v53, %s2777_s20 }
 0x409   : > { %v530_v41 = vpop.xlane.xlu1 %529 }
 0x40a   : > { %v538_v43 = vsub.f32 %v514_v11, %v530_v41 }
 0x40c   : > { %v541_v45 = vmul.f32 1.442695, %v538_v43 }
 0x40d   : > { %v533_v42 = vpop.xlane.xlu0 %532 }
 0x40e   : > { %v539_v46 = vsub.f32 %v519_v16, %v533_v42  ;;  %2694 = vpow2.f32 %v541_v45 }
 0x410   : > { %v543_v52 = vmul.f32 1.442695, %v539_v46 }
 0x411   : > { %v537_v44 = vpop.xlane.xlu0 %536 }
 0x412   : > { %v540_v54 = vsub.f32 %v524_v21, %v537_v44 }
 0x414   : > { %v545_v58 = vmul.f32 1.442695, %v540_v54 }
 0x415   : > { %v773_v47 = vpop.xlane.xlu0 %772 }
 0x416   : > { %v780_v50 = vsub.f32 %v758_v28, %v773_v47 }
 0x418   : > { %v783_v55 = vmul.f32 1.442695, %v780_v50  ;;  %v2695_v4 = vpop.eup %2694 }
 0x419   : > { %v776_v56 = vpop.xlane.xlu1 %775  ;;  %v547_v15 = vsel %vm527_vm5, %v2695_v4, 0.0 }
 0x41a   : > { %2696 = vpow2.f32 %v783_v55  ;;  %v781_v57 = vsub.f32 %v763_v33, %v776_v56 }
 0x41b   : > { %2698 = vpow2.f32 %v543_v52 }
 0x41c   : > { %v785_v60 = vmul.f32 1.442695, %v781_v57 }
 0x41d   : > { %v2665_v61 = vpop.permute.xlu1 %2664  ;;  %v779_v62 = vpop.xlane.xlu0 %778 }
 0x41e   : > { %2700 = vpow2.f32 %v785_v60  ;;  %v2667_v63 = vunpack.i.h.bf16 %v2665_v61  ;;  %v2666_v0 = vunpack.i.l.bf16 %v2665_v61  ;;  %v782_v1 = vsub.f32 %v768_v38, %v779_v62 }
 0x41f   : > { %2702 = vpow2.f32 %v545_v58 }
 0x420   : > { %v787_v2 = vmul.f32 1.442695, %v782_v1  ;;  %v2579_v5 = vpack.c.bf16 %v2667_v63, %v2666_v0 }
 0x421   : > { %v561_v3 = vpop.permute.xlu0 %560  ;;  %v803_v9 = vpop.permute.xlu1 %802 }
 0x422   : > { %2704 = vpow2.f32 %v787_v2  ;;  %2359 = vmatpush3.msk.msra.mxu0 %vm573_vm7, %v561_v3 }
 0x423   : > { %2361 = vmatmul.mubr.msk.f32.vlgmr.msra.gmra.mrb[0].mxu0 %vm527_vm5, %v2695_v4  ;;  %2578 = vmatprep.subr.bf16.mxu0 %v2771_v26 }
 0x424   : > { %v2697_v6 = vpop.eup %2696  ;;  %2580 = vmatpush3.bf16.msra.mxu0 %v2579_v5  ;;  %2363 = vmatprep.mubr.msk.f32.mxu0 %vm2772_vm2, %v2773_v27 }
 0x425   : > { %v789_v7 = vsel %vm527_vm5, %v2697_v6, 0.0  ;;  %2388 = vmatprep.subr.mxu0 %v2773_v27  ;;  %v2699_v8 = vpop.eup %2698 }
 0x426   : > { %790 = vadd.xlane.f32.xlu1 %v789_v7  ;;  %v550_v16 = vsel %vm527_vm5, %v2699_v8, 0.0 }
 0x427   : > { %2364 = vmatmul.mubr.msk.f32.gmra.mrb[2].mxu0 %vm527_vm5, %v2699_v8 }
 0x428   : > { %v2701_v10 = vpop.eup %2700  ;;  %2389 = vmatpush3.msk.msra.mxu0 %vm573_vm7, %v803_v9  ;;  %2366 = vmatprep.mubr.msk.f32.mxu0 %vm2772_vm2, %v2773_v27 }
 0x429   : > { %v792_v11 = vsel %vm527_vm5, %v2701_v10, 0.0  ;;  %2410 = vmatprep.subr.mxu0 %v2773_v27  ;;  %v2703_v12 = vpop.eup %2702 }
 0x42a   : > { %793 = vadd.xlane.f32.xlu0 %v792_v11  ;;  %v553_v17 = vsel %vm534_vm6, %v2703_v12, 0.0 }
 0x42b   : > { %2367 = vmatmul.mubr.msk.f32.gmra.mrb[4].mxu0 %vm527_vm5, %v2703_v12 }
 0x42c   : > { %v2705_v13 = vpop.eup %2704  ;;  %2390 = vmatprep.mubr.msk.f32.mxu0 %vm2772_vm2, %v2773_v27 }
 0x42d   : > { %v795_v14 = vsel %vm534_vm6, %v2705_v13, 0.0 }
 0x42e   : > { %796 = vadd.xlane.f32.xlu0 %v795_v14 }
 0x42f   : > { %2391 = vmatmul.mubr.msk.f32.vlgmr.msra.gmra.mrb[6].mxu0 %vm527_vm5, %v2697_v6 }
 0x430   : > { %2393 = vmatprep.mubr.msk.f32.mxu0 %vm2772_vm2, %v2773_v27  ;;  %2411 = vmatpush3.msra.mxu0 %v662_v18 }
 0x431   : > { %2585 = vmatprep.subr.bf16.mxu0 %v2771_v26 }
 0x433   : > { %2394 = vmatmul.mubr.msk.f32.gmra.mrb[8].mxu0 %vm527_vm5, %v2701_v10 }
 0x434   : > { %2396 = vmatprep.mubr.msk.f32.mxu0 %vm2772_vm2, %v2773_v27 }
 0x437   : > { %1097 = vrot.lane.b32.xlu1 %v2892_v53, %s2779_s15  ;;  %2397 = vmatmul.mubr.msk.f32.gmra.mrb[10].mxu0 %vm527_vm5, %v2705_v13 }
 0x438   : > { %2412 = vmatprep.mubr.msk.f32.mxu0 %vm2772_vm2, %v2773_v27 }
 0x43b   : > { %1087 = vrot.lane.b32.xlu1 %v2884_v48, %s2780_s16 }
 0x43f   : > { %1089 = vrot.lane.b32.xlu1 %v2886_v49, %s2780_s16 }
 0x444   : > { %2669 = vrot.lane.b32.xlu0 %v2890_v51, %s2779_s15 }
 0x448   : > { %1091 = vrot.lane.b32.xlu0 %v2892_v53, %s2780_s16 }
 0x463   : > { %548 = vadd.xlane.f32.xlu1 %v547_v15 }
 0x467   : > { %551 = vadd.xlane.f32.xlu0 %v550_v16 }
 0x46b   : > { %554 = vadd.xlane.f32.xlu0 %v553_v17 }
 0x474   : > { %2674 = vrot.lane.b32.xlu1 %v2890_v51, %s2781_s17 }
 0x4b3   : > { %v791_v20 = vpop.xlane.xlu1 %790 }
 0x4b7   : > { %v794_v21 = vpop.xlane.xlu0 %793  ;;  %v1098_v22 = vpop.permute.xlu1 %1097 }
 0x4bb   : > { %v797_v23 = vpop.xlane.xlu0 %796  ;;  %v1088_v24 = vpop.permute.xlu1 %1087 }
 0x4bf   : > { %v2670_v25 = vpop.permute.xlu0 %2669  ;;  %v1090_v28 = vpop.permute.xlu1 %1089 }
 0x4c0   : > { %v2672_v46 = vunpack.i.h.bf16 %v2670_v25  ;;  %v2671_v47 = vunpack.i.l.bf16 %v2670_v25 }
 0x4c2   : > { %v2582_v58 = vpack.c.bf16 %v2672_v46, %v2671_v47 }
 0x4c3   : > { %v3013_v29 = vpop.permute.xlu0 %1091 }
 0x4f0   : > { %v549_v30 = vpop.xlane.xlu1 %548 }
 0x4f1   : > { %2706 = vrcp.f32 %v549_v30 }
 0x4f4   : > { %v552_v31 = vpop.xlane.xlu0 %551  ;;  %v2675_v32 = vpop.permute.xlu1 %2674 }
 0x4f5   : > { %2708 = vrcp.f32 %v552_v31  ;;  %v2677_v36 = vunpack.i.h.bf16 %v2675_v32  ;;  %v2676_v37 = vunpack.i.l.bf16 %v2675_v32  ;;  %v2185_v31 = vld [vmem:[%s3310_s3 + $0x40] sm:$0x1] }
 0x4f6   : > { %v642_v33 = vpop.f32.mrb[0].mxu0  ;;  %2710 = vrcp.f32 %v791_v20  ;;  %v2183_v20 = vld [vmem:[%s3310_s3 + $0x30] sm:$0xff] }
 0x4f7   : > { %v2362_v34 = vpop.f32.mrb[1].mxu0  ;;  %v2586_v42 = vpack.c.bf16 %v2677_v36, %v2676_v37 }
 0x4f8   : > { %v555_v35 = vpop.xlane.xlu0 %554 }
 0x4f9   : > { %2712 = vrcp.f32 %v555_v35 }
 0x4fa   : > { %v647_v38 = vpop.f32.mrb[2].mxu0  ;;  %2714 = vrcp.f32 %v794_v21 }
 0x4fb   : > { %v2707_v39 = vpop.eup %2706  ;;  %v2365_v40 = vpop.f32.mrb[3].mxu0  ;;  %2716 = vrcp.f32 %v797_v23 }
 0x4fc   : > { %v659_v41 = vmul.f32 %v2707_v39, %v642_v33 }
 0x4fe   : > { %v652_v43 = vpop.f32.mrb[4].mxu0  ;;  %2413 = vmatmul.mubr.msk.f32.vlgmr.msra.gmra.mrb[12].mxu0 %vm434_vm3, %v659_v41 }
 0x4ff   : > { %v2709_v44 = vpop.eup %2708  ;;  %2587 = vmatpush3.bf16.msra.mxu0 %v2586_v42  ;;  %v2368_v45 = vpop.f32.mrb[5].mxu0  ;;  %2415 = vmatprep.mubr.msk.f32.mxu0 %vm2772_vm2, %v2773_v27 }
 0x500   : > { %v660_v50 = vmul.f32 %v2709_v44, %v647_v38  ;;  %2440 = vmatprep.subr.mxu0 %v2773_v27  ;;  %v2711_v52 = vpop.eup %2710 }
 0x502   : > { %v883_v54 = vpop.f32.mrb[6].mxu0  ;;  %2416 = vmatmul.mubr.msk.f32.gmra.mrb[14].mxu0 %vm434_vm3, %v660_v50 }
 0x503   : > { %v2713_v55 = vpop.eup %2712  ;;  %v900_v56 = vmul.f32 %v2711_v52, %v883_v54  ;;  %v2392_v57 = vpop.f32.mrb[7].mxu0  ;;  %2418 = vmatprep.mubr.msk.f32.mxu0 %vm2772_vm2, %v2773_v27 }
 0x504   : > { %v661_v60 = vmul.f32 %v2713_v55, %v652_v43  ;;  %v2715_v61 = vpop.eup %2714 }
 0x505   : > { %2402 = vmatmul.mubr.msk.f32.vlgmr.msra.gmra.mrb[18].mxu1 %vm434_vm3, %v900_v56  ;;  %v2717_v1 = vpop.eup %2716 }
 0x506   : > { %2584 = vmatpush3.bf16.xpose.msk.msra.mxu1 %vm2905_vm4, %v2582_v58  ;;  %v888_v62 = vpop.f32.mrb[8].mxu0  ;;  %2419 = vmatmul.mubr.msk.f32.gmra.mrb[16].mxu0 %vm434_vm3, %v661_v60 }
 0x507   : > { %v901_v63 = vmul.f32 %v2715_v61, %v888_v62  ;;  %v2395_v0 = vpop.f32.mrb[9].mxu0  ;;  %2404 = vmatprep.mubr.msk.f32.mxu1 %vm2772_vm2, %v2773_v27  ;;  %2425 = vmatprep.subr.mxu1 %v2773_v27 }
 0x508   : > { %2442 = vmatprep.mubr.msk.f32.mxu0 %vm2772_vm2, %v2773_v27 }
 0x509   : > { %2405 = vmatmul.mubr.msk.f32.gmra.mrb[20].mxu1 %vm434_vm3, %v901_v63  ;;  %v2196_v63 = vld [vmem:[%s3311_s4 + $0x10] sm:$0xff] }
 0x50a   : > { %v893_v2 = vpop.f32.mrb[10].mxu0  ;;  %2407 = vmatprep.mubr.msk.f32.mxu1 %vm2772_vm2, %v2773_v27 }
 0x50b   : > { %v902_v3 = vmul.f32 %v2717_v1, %v893_v2  ;;  %v2398_v4 = vpop.f32.mrb[11].mxu0 }
 0x50d   : > { %2408 = vmatmul.mubr.msk.f32.gmra.mrb[22].mxu1 %vm434_vm3, %v902_v3 }
 0x50e   : > { %2426 = vmatpush3.xpose.msk.msra.mxu1 %vm434_vm3, %v1098_v22  ;;  %2427 = vmatprep.mubr.msk.f32.mxu1 %vm2772_vm2, %v2773_v27 }
 0x50f   : > { %2451 = vmatprep.subr.mxu1 %v2773_v27 }
 0x511   : > { %2428 = vmatmul.mubr.msk.f32.vlgmr.msra.gmra.mrb[24].mxu1 %vm434_vm3, %v1088_v24  ;;  %v2184_v24 = vld [vmem:[%s3310_s3 + $0x38] sm:$0xff] }
 0x512   : > { %2430 = vmatprep.mubr.msk.f32.mxu1 %vm2772_vm2, %v2773_v27  ;;  %2452 = vmatpush3.msra.mxu1 %v2196_v63 }
 0x513   : > { %2592 = vmatprep.subr.bf16.mxu1 %v2771_v26 }
 0x515   : > { %2431 = vmatmul.mubr.msk.f32.gmra.mrb[26].mxu1 %vm434_vm3, %v1090_v28 }
 0x516   : > { %2433 = vmatprep.mubr.msk.f32.mxu1 %vm2772_vm2, %v2773_v27 }
 0x519   : > { %2434 = vmatmul.mubr.msk.f32.gmra.mrb[28].mxu1 %vm434_vm3, %v3013_v29 }
 0x51a   : > { %2453 = vmatprep.mubr.msk.f32.mxu1 %vm2772_vm2, %v2773_v27 }
 0x5d1   : > { %v1069_v5 = vpop.f32.mrb[12].mxu0 }
 0x5d2   : > { %v2414_v6 = vpop.f32.mrb[13].mxu0 }
 0x5d5   : > { %v1074_v7 = vpop.f32.mrb[14].mxu0 }
 0x5d6   : > { %v2417_v8 = vpop.f32.mrb[15].mxu0 }
 0x5d8   : > { %v980_v9 = vpop.f32.mrb[18].mxu1 }
 0x5d9   : > { %v3049_v10 = vadd.f32 %v1069_v5, %v980_v9  ;;  %v2403_v11 = vpop.f32.mrb[19].mxu1  ;;  %v1079_v12 = vpop.f32.mrb[16].mxu0 }
 0x5da   : > { %v2420_v13 = vpop.f32.mrb[17].mxu0 }
 0x5dc   : > { %v985_v14 = vpop.f32.mrb[20].mxu1 }
 0x5dd   : > { %v3051_v15 = vadd.f32 %v1074_v7, %v985_v14  ;;  %v2406_v16 = vpop.f32.mrb[21].mxu1 }
 0x5e0   : > { %v990_v17 = vpop.f32.mrb[22].mxu1 }
 0x5e1   : > { %v3053_v18 = vadd.f32 %v1079_v12, %v990_v17  ;;  %v2409_v19 = vpop.f32.mrb[23].mxu1  ;;  %v2200_v17 = vld [vmem:[%s3310_s3 + $0x48] sm:$0xff] }
 0x5e4   : > { %v1177_v21 = vpop.f32.mrb[24].mxu1 }
 0x5e5   : > { %v1178_v22 = vadd.f32 %v2183_v20, %v1177_v21  ;;  %v2429_v23 = vpop.f32.mrb[25].mxu1 }
 0x5e7   : > { %v1191_v25 = vsel %vm527_vm5, %v1178_v22, -inf }
 0x5e8   : > { %1192 = vmax.xlane.f32.xlu0 %v1191_v25  ;;  %v1182_v28 = vpop.f32.mrb[26].mxu1 }
 0x5e9   : > { %v1183_v29 = vadd.f32 %v2184_v24, %v1182_v28  ;;  %v2432_v30 = vpop.f32.mrb[27].mxu1 }
 0x5eb   : > { %v1194_v32 = vsel %vm527_vm5, %v1183_v29, -inf }
 0x5ec   : > { %1195 = vmax.xlane.f32.xlu1 %v1194_v32  ;;  %v1187_v33 = vpop.f32.mrb[28].mxu1 }
 0x5ed   : > { %v1188_v34 = vadd.f32 %v2185_v31, %v1187_v33  ;;  %v2435_v35 = vpop.f32.mrb[29].mxu1 }
 0x5ef   : > { %v1197_v36 = vsel %vm534_vm6, %v1188_v34, -inf }
 0x5f0   : > { %1198 = vmax.xlane.f32.xlu0 %v1197_v36 }
 0x5fd   : > { %2679 = vrot.lane.b32.xlu1 %v2890_v51, %s2782_s9 }
 0x601   : > { %1431 = vrot.lane.b32.xlu1 %v2892_v53, %s2782_s9 }
 0x605   : > { %1421 = vrot.lane.b32.xlu1 %v2884_v48, %s2783_s10 }
 0x606   : > { %1222 = vrot.lane.b32.xlu0 %v2892_v53, %s2781_s17 }
 0x609   : > { %1425 = vrot.lane.b32.xlu1 %v2892_v53, %s2783_s10 }
 0x60a   : > { %1423 = vrot.lane.b32.xlu0 %v2886_v49, %s2783_s10  ;;  %s278_s10 = scalar_lea.vmem %s3314_s7, %s2625_s26 }
 0x675   : > { %v1193_v37 = vpop.xlane.xlu0 %1192 }
 0x676   : > { %v1200_v38 = vsub.f32 %v1178_v22, %v1193_v37  ;;  %v2201_v22 = vld [vmem:[%s3310_s3 + $0x50] sm:$0xff] }
 0x678   : > { %v1203_v39 = vmul.f32 1.442695, %v1200_v38 }
 0x679   : > { %v1196_v40 = vpop.xlane.xlu1 %1195 }
 0x67a   : > { %2718 = vpow2.f32 %v1203_v39  ;;  %v1201_v41 = vsub.f32 %v1183_v29, %v1196_v40  ;;  %v2202_v29 = vld [vmem:[%s3310_s3 + $0x58] sm:$0x1] }
 0x67c   : > { %v1205_v42 = vmul.f32 1.442695, %v1201_v41 }
 0x67d   : > { %v1199_v43 = vpop.xlane.xlu0 %1198  ;;  %v2680_v46 = vpop.permute.xlu1 %2679 }
 0x67e   : > { %2720 = vpow2.f32 %v1205_v42  ;;  %v1202_v44 = vsub.f32 %v1188_v34, %v1199_v43  ;;  %v2682_v49 = vunpack.i.h.bf16 %v2680_v46  ;;  %v2681_v50 = vunpack.i.l.bf16 %v2680_v46 }
 0x680   : > { %v1207_v45 = vmul.f32 1.442695, %v1202_v44  ;;  %v2589_v55 = vpack.c.bf16 %v2682_v49, %v2681_v50 }
 0x681   : > { %v1223_v48 = vpop.permute.xlu0 %1222  ;;  %v1432_v60 = vpop.permute.xlu1 %1431 }
 0x682   : > { %2722 = vpow2.f32 %v1207_v45  ;;  %2441 = vmatpush3.msk.msra.mxu0 %vm573_vm7, %v1223_v48 }
 0x683   : > { %2588 = vmatprep.subr.bf16.mxu0 %v2771_v26 }
 0x684   : > { %v2719_v47 = vpop.eup %2718 }
 0x685   : > { %2443 = vmatmul.mubr.msk.f32.vlgmr.msra.gmra.mrb[18].mxu0 %vm527_vm5, %v2719_v47  ;;  %v1209_v52 = vsel %vm527_vm5, %v2719_v47, 0.0  ;;  %v1422_v59 = vpop.permute.xlu1 %1421  ;;  %v1424_v61 = vpop.permute.xlu0 %1423 }
 0x686   : > { %1210 = vadd.xlane.f32.xlu0 %v1209_v52  ;;  %2445 = vmatprep.mubr.msk.f32.mxu0 %vm2772_vm2, %v2773_v27 }
 0x688   : > { %v2721_v54 = vpop.eup %2720 }
 0x689   : > { %2446 = vmatmul.mubr.msk.f32.gmra.mrb[20].mxu0 %vm527_vm5, %v2721_v54  ;;  %v1212_v56 = vsel %vm527_vm5, %v2721_v54, 0.0  ;;  %v1426_v62 = vpop.permute.xlu1 %1425 }
 0x68a   : > { %2591 = vmatpush3.bf16.xpose.msk.msra.mxu0 %vm2905_vm4, %v2589_v55  ;;  %1213 = vadd.xlane.f32.xlu1 %v1212_v56  ;;  %v2213_v55 = vld [vmem:[%s3311_s4 + $0x18] sm:$0xff] }
 0x68b   : > { %2448 = vmatprep.mubr.msk.f32.mxu0 %vm2772_vm2, %v2773_v27  ;;  %2466 = vmatprep.subr.mxu0 %v2773_v27 }
 0x68c   : > { %v2723_v57 = vpop.eup %2722 }
 0x68d   : > { %2449 = vmatmul.mubr.msk.f32.gmra.mrb[22].mxu0 %vm527_vm5, %v2723_v57  ;;  %v1215_v58 = vsel %vm534_vm6, %v2723_v57, 0.0 }
 0x68e   : > { %1216 = vadd.xlane.f32.xlu0 %v1215_v58  ;;  %2468 = vmatprep.mubr.msk.f32.mxu0 %vm2772_vm2, %v2773_v27 }
 0x692   : > { %2467 = vmatpush3.xpose.msk.msra.mxu0 %vm434_vm3, %v1432_v60 }
 0x693   : > { %2492 = vmatprep.subr.mxu0 %v2773_v27 }
 0x695   : > { %2469 = vmatmul.mubr.msk.f32.vlgmr.msra.gmra.mrb[24].mxu0 %vm434_vm3, %v1422_v59 }
 0x696   : > { %2471 = vmatprep.mubr.msk.f32.mxu0 %vm2772_vm2, %v2773_v27  ;;  %2493 = vmatpush3.msra.mxu0 %v2213_v55  ;;  %v1801_v55 = vld [vmem:[%s3312_s5] sm:$0xff] }
 0x697   : > { %2601 = vmatprep.subr.bf16.mxu0 %v2771_v26 }
 0x699   : > { %2472 = vmatmul.mubr.msk.f32.gmra.mrb[26].mxu0 %vm434_vm3, %v1424_v61 }
 0x69a   : > { %2474 = vmatprep.mubr.msk.f32.mxu0 %vm2772_vm2, %v2773_v27 }
 0x69d   : > { %2475 = vmatmul.mubr.msk.f32.gmra.mrb[28].mxu0 %vm434_vm3, %v1426_v62 }
 0x69e   : > { %2494 = vmatprep.mubr.msk.f32.mxu0 %vm2772_vm2, %v2773_v27 }
 0x713   : > { %v1211_v0 = vpop.xlane.xlu0 %1210 }
 0x714   : > { %2724 = vrcp.f32 %v1211_v0 }
 0x717   : > { %v1214_v1 = vpop.xlane.xlu1 %1213 }
 0x718   : > { %2726 = vrcp.f32 %v1214_v1 }
 0x71b   : > { %v1217_v2 = vpop.xlane.xlu0 %1216 }
 0x71c   : > { %2728 = vrcp.f32 %v1217_v2 }
 0x71e   : > { %v2725_v3 = vpop.eup %2724 }
 0x722   : > { %v2727_v7 = vpop.eup %2726 }
 0x726   : > { %v2729_v12 = vpop.eup %2728 }
 0x758   : > { %v1303_v4 = vpop.f32.mrb[18].mxu0 }
 0x759   : > { %v1320_v5 = vmul.f32 %v2725_v3, %v1303_v4  ;;  %v2444_v6 = vpop.f32.mrb[19].mxu0 }
 0x75b   : > { %2454 = vmatmul.mubr.msk.f32.vlgmr.msra.gmra.mrb[30].mxu1 %vm434_vm3, %v1320_v5 }
 0x75c   : > { %v1308_v8 = vpop.f32.mrb[20].mxu0  ;;  %2456 = vmatprep.mubr.msk.f32.mxu1 %vm2772_vm2, %v2773_v27 }
 0x75d   : > { %v1321_v9 = vmul.f32 %v2727_v7, %v1308_v8  ;;  %v2447_v11 = vpop.f32.mrb[21].mxu0 }
 0x75f   : > { %2457 = vmatmul.mubr.msk.f32.gmra.mrb[32].mxu1 %vm434_vm3, %v1321_v9 }
 0x760   : > { %v1313_v13 = vpop.f32.mrb[22].mxu0  ;;  %2459 = vmatprep.mubr.msk.f32.mxu1 %vm2772_vm2, %v2773_v27 }
 0x761   : > { %v1322_v14 = vmul.f32 %v2729_v12, %v1313_v13  ;;  %v2450_v16 = vpop.f32.mrb[23].mxu0 }
 0x763   : > { %2460 = vmatmul.mubr.msk.f32.gmra.mrb[34].mxu1 %vm434_vm3, %v1322_v14 }
 0x764   : > { %2483 = vmatprep.mubr.msk.f32.mxu1 %vm2772_vm2, %v2773_v27 }
 0x768   : > { %v1511_v19 = vpop.f32.mrb[24].mxu0 }
 0x769   : > { %v1512_v20 = vadd.f32 %v2200_v17, %v1511_v19  ;;  %v2470_v21 = vpop.f32.mrb[25].mxu0  ;;  %v2217_v19 = vld [vmem:[%s3309_s2 + $0x1] ss:$0 sm:$0xff] }
 0x76b   : > { %v1525_v23 = vsel %vm527_vm5, %v1512_v20, -inf }
 0x76c   : > { %1526 = vmax.xlane.f32.xlu0 %v1525_v23  ;;  %v1516_v24 = vpop.f32.mrb[26].mxu0 }
 0x76d   : > { %v1517_v25 = vadd.f32 %v2201_v22, %v1516_v24  ;;  %v2473_v28 = vpop.f32.mrb[27].mxu0 }
 0x76e   : > { %v2761_v28 = vld [vmem:[%s2841_s29 + $0x8] sm:$0xff] }
 0x76f   : > { %v1528_v30 = vsel %vm527_vm5, %v1517_v25, -inf }
 0x770   : > { %1529 = vmax.xlane.f32.xlu0 %v1528_v30  ;;  %v1521_v31 = vpop.f32.mrb[28].mxu0 }
 0x771   : > { %v1522_v32 = vadd.f32 %v2202_v29, %v1521_v31  ;;  %v2476_v33 = vpop.f32.mrb[29].mxu0 }
 0x773   : > { %v1531_v34 = vsel %vm534_vm6, %v1522_v32, -inf }
 0x774   : > { %1532 = vmax.xlane.f32.xlu1 %v1531_v34 }
 0x785   : > { %1556 = vrot.lane.b32.xlu1 %v2892_v53, %s2784_s19 }
 0x786   : > { %2684 = vrot.lane.b32.xlu0 %v2890_v51, %s2784_s19 }
 0x7f9   : > { %v1527_v35 = vpop.xlane.xlu0 %1526 }
 0x7fa   : > { %v1534_v36 = vsub.f32 %v1512_v20, %v1527_v35  ;;  %v2760_v20 = vld [vmem:[%s2841_s29] sm:$0xff]  ;;  %v2762_v35 = vld [vmem:[%s2841_s29 + $0x10] sm:$0x1] }
 0x7fc   : > { %v1537_v37 = vmul.f32 1.442695, %v1534_v36 }
 0x7fd   : > { %v1530_v38 = vpop.xlane.xlu0 %1529 }
 0x7fe   : > { %2730 = vpow2.f32 %v1537_v37  ;;  %v1535_v39 = vsub.f32 %v1517_v25, %v1530_v38 }
 0x800   : > { %v1539_v40 = vmul.f32 1.442695, %v1535_v39 }
 0x801   : > { %v1533_v41 = vpop.xlane.xlu1 %1532  ;;  %v2685_v42 = vpop.permute.xlu0 %2684 }
 0x802   : > { %2732 = vpow2.f32 %v1539_v40  ;;  %v1536_v43 = vsub.f32 %v1522_v32, %v1533_v41  ;;  %v2687_v44 = vunpack.i.h.bf16 %v2685_v42  ;;  %v2686_v45 = vunpack.i.l.bf16 %v2685_v42 }
 0x804   : > { %v1541_v46 = vmul.f32 1.442695, %v1536_v43  ;;  %v2593_v48 = vpack.c.bf16 %v2687_v44, %v2686_v45 }
 0x805   : > { %v1557_v53 = vpop.permute.xlu1 %1556 }
 0x806   : > { %2734 = vpow2.f32 %v1541_v46  ;;  %2594 = vmatpush3.bf16.msra.mxu1 %v2593_v48 }
 0x807   : > { %2481 = vmatprep.subr.mxu1 %v2773_v27 }
 0x808   : > { %v2731_v51 = vpop.eup %2730 }
 0x809   : > { %v1543_v47 = vsel %vm527_vm5, %v2731_v51, 0.0 }
 0x80a   : > { %1544 = vadd.xlane.f32.xlu1 %v1543_v47  ;;  %2482 = vmatpush3.msk.msra.mxu1 %vm573_vm7, %v1557_v53 }
 0x80b   : > { %2484 = vmatmul.mubr.msk.f32.vlgmr.msra.gmra.mrb[36].mxu1 %vm527_vm5, %v2731_v51  ;;  %2595 = vmatprep.subr.bf16.mxu1 %v2771_v26 }
 0x80c   : > { %v2733_v49 = vpop.eup %2732  ;;  %2486 = vmatprep.mubr.msk.f32.mxu1 %vm2772_vm2, %v2773_v27 }
 0x80d   : > { %v1546_v50 = vsel %vm527_vm5, %v2733_v49, 0.0 }
 0x80e   : > { %1547 = vadd.xlane.f32.xlu0 %v1546_v50 }
 0x80f   : > { %2487 = vmatmul.mubr.msk.f32.gmra.mrb[38].mxu1 %vm527_vm5, %v2733_v49 }
 0x810   : > { %v2735_v52 = vpop.eup %2734  ;;  %2489 = vmatprep.mubr.msk.f32.mxu1 %vm2772_vm2, %v2773_v27 }
 0x811   : > { %v1549_v54 = vsel %vm534_vm6, %v2735_v52, 0.0 }
 0x812   : > { %1550 = vadd.xlane.f32.xlu0 %v1549_v54 }
 0x813   : > { %2490 = vmatmul.mubr.msk.f32.gmra.mrb[40].mxu1 %vm527_vm5, %v2735_v52 }
 0x814   : > { %2511 = vmatprep.mubr.msk.f32.mxu1 %vm2772_vm2, %v2773_v27 }
 0x82e   : > { %v1400_v56 = vpop.f32.mrb[30].mxu1 }
 0x82f   : > { %v1414_v57 = vadd.f32 %v1400_v56, %v3049_v10  ;;  %v2455_v58 = vpop.f32.mrb[31].mxu1  ;;  %v1802_v56 = vld [vmem:[%s3312_s5 + $0x8] sm:$0xff] }
 0x830   : > { %v1803_v58 = vld [vmem:[%s3312_s5 + $0x10] sm:$0xff] }
 0x832   : > { %v1405_v60 = vpop.f32.mrb[32].mxu1 }
 0x833   : > { %v1415_v59 = vadd.f32 %v1405_v60, %v3051_v15  ;;  %v2458_v61 = vpop.f32.mrb[33].mxu1  ;;  %v1804_v60 = vld [vmem:[%s3312_s5 + $0x18] sm:$0xff] }
 0x836   : > { %v1410_v62 = vpop.f32.mrb[34].mxu1 }
 0x837   : > { %v1416_v63 = vadd.f32 %v1410_v62, %v3053_v18  ;;  %v2461_v0 = vpop.f32.mrb[35].mxu1 }
 0x897   : > { %v1545_v1 = vpop.xlane.xlu1 %1544 }
 0x898   : > { %2736 = vrcp.f32 %v1545_v1 }
 0x89b   : > { %v1548_v2 = vpop.xlane.xlu0 %1547 }
 0x89c   : > { %2738 = vrcp.f32 %v1548_v2 }
 0x89f   : > { %v1551_v3 = vpop.xlane.xlu0 %1550 }
 0x8a0   : > { %2740 = vrcp.f32 %v1551_v3 }
 0x8a2   : > { %v2737_v4 = vpop.eup %2736 }
 0x8a6   : > { %v2739_v10 = vpop.eup %2738 }
 0x8aa   : > { %v2741_v9 = vpop.eup %2740 }
 0x8de   : > { %v1637_v5 = vpop.f32.mrb[36].mxu1 }
 0x8df   : > { %v1654_v6 = vmul.f32 %v2737_v4, %v1637_v5  ;;  %v2485_v7 = vpop.f32.mrb[37].mxu1 }
 0x8e1   : > { %2495 = vmatmul.mubr.msk.f32.vlgmr.msra.gmra.mrb[30].mxu0 %vm434_vm3, %v1654_v6 }
 0x8e2   : > { %v1642_v8 = vpop.f32.mrb[38].mxu1  ;;  %2497 = vmatprep.mubr.msk.f32.mxu0 %vm2772_vm2, %v2773_v27 }
 0x8e3   : > { %v1655_v15 = vmul.f32 %v2739_v10, %v1642_v8  ;;  %v2488_v18 = vpop.f32.mrb[39].mxu1 }
 0x8e5   : > { %2498 = vmatmul.mubr.msk.f32.gmra.mrb[32].mxu0 %vm434_vm3, %v1655_v15 }
 0x8e6   : > { %v1647_v11 = vpop.f32.mrb[40].mxu1  ;;  %2500 = vmatprep.mubr.msk.f32.mxu0 %vm2772_vm2, %v2773_v27 }
 0x8e7   : > { %v1656_v12 = vmul.f32 %v2741_v9, %v1647_v11  ;;  %v2491_v13 = vpop.f32.mrb[41].mxu1  ;;  %v1980_v9 = vld [vmem:[%s3313_s6] sm:$0xff]  ;;  %v1981_v11 = vld [vmem:[%s3313_s6 + $0x8] sm:$0xff] }
 0x8e8   : > { %v1982_v13 = vld [vmem:[%s3313_s6 + $0x10] sm:$0xff] }
 0x8e9   : > { %2501 = vmatmul.mubr.msk.f32.gmra.mrb[34].mxu0 %vm434_vm3, %v1656_v12  ;;  %v2602_v12 = vpack.c.bf16 %v1981_v11, %v1980_v9 }
 0x8ea   : > { %2552 = vmatprep.mubr.msk.f32.mxu0 %vm2772_vm2, %v2773_v27 }
 0x8eb   : > { %2603 = vmatpush3.bf16.msra.mxu0 %v2602_v12 }
 0x8ec   : > { %2604 = vmatprep.subr.bf16.mxu0 %v2771_v26 }
 0x9b4   : > { %v1734_v14 = vpop.f32.mrb[30].mxu0 }
 0x9b5   : > { %v1748_v16 = vadd.f32 %v1734_v14, %v1414_v57  ;;  %v2496_v17 = vpop.f32.mrb[31].mxu0  ;;  %v2596_v57 = vpack.c.bf16 %v1802_v56, %v1801_v55  ;;  %v1983_v14 = vld [vmem:[%s3313_s6 + $0x18] sm:$0xff] }
 0x9b6   : > { %v1984_v17 = vld [vmem:[%s3313_s6 + $0x20] sm:$0xff] }
 0x9b7   : > { %v1751_v21 = vadd.f32 %v2760_v20, %v1748_v16  ;;  %2597 = vmatpush3.bf16.msra.mxu1 %v2596_v57  ;;  %v2605_v16 = vpack.c.bf16 %v1983_v14, %v1982_v13 }
 0x9b8   : > { %v1739_v22 = vpop.f32.mrb[32].mxu0  ;;  %2598 = vmatprep.subr.bf16.mxu1 %v2771_v26 }
 0x9b9   : > { %v3164_v23 = vadd.f32 %v2217_v19, %v1751_v21  ;;  %v1749_v24 = vadd.f32 %v1739_v22, %v1415_v59  ;;  %v2499_v25 = vpop.f32.mrb[33].mxu0  ;;  %v2599_v59 = vpack.c.bf16 %v1804_v60, %v1803_v58  ;;  %2606 = vmatpush3.bf16.msra.mxu0 %v2605_v16  ;;  %v1986_v21 = vld [vmem:[%s3313_s6 + $0x30] sm:$0xff]  ;;  %v1987_v22 = vld [vmem:[%s3313_s6 + $0x38] sm:$0xff] }
 0x9ba   : > { %2607 = vmatprep.subr.bf16.mxu0 %v2771_v26  ;;  %v1988_v25 = vld [vmem:[%s3313_s6 + $0x40] sm:$0xff] }
 0x9bb   : > { %v1752_v29 = vadd.f32 %v2761_v28, %v1749_v24  ;;  %v1762_v30 = vsel %vm282_vm0, %v3164_v23, 0.0  ;;  %2600 = vmatpush3.bf16.msra.mxu1 %v2599_v59  ;;  %v2611_v24 = vpack.c.bf16 %v1987_v22, %v1986_v21  ;;  %v1989_v28 = vld [vmem:[%s3313_s6 + $0x48] sm:$0xff] }
 0x9bc   : > { %1763 = vadd.xlane.f32.xlu1 %v1762_v30  ;;  %v1744_v31 = vpop.f32.mrb[34].mxu0  ;;  %v1990_v30 = vld [vmem:[%s3313_s6 + $0x50] sm:$0xff] }
 0x9bd   : > { %v3169_v32 = vadd.f32 %v2217_v19, %v1752_v29  ;;  %v1750_v33 = vadd.f32 %v1744_v31, %v1416_v63  ;;  %v2502_v34 = vpop.f32.mrb[35].mxu0  ;;  %v2614_v29 = vpack.c.bf16 %v1989_v28, %v1988_v25  ;;  %v1991_v31 = vld [vmem:[%s3313_s6 + $0x58] sm:$0xff] }
 0x9be   : > { %v1992_v34 = vld [vmem:[%s3313_s6 + $0x60] sm:$0xff] }
 0x9bf   : > { %v1753_v36 = vadd.f32 %v2762_v35, %v1750_v33  ;;  %v1765_v37 = vsel %vm282_vm0, %v3169_v32, 0.0  ;;  %v2617_v33 = vpack.c.bf16 %v1991_v31, %v1990_v30  ;;  %v1993_v35 = vld [vmem:[%s3313_s6 + $0x68] sm:$0xff] }
 0x9c0   : > { %1766 = vadd.xlane.f32.xlu0 %v1765_v37  ;;  %v1994_v37 = vld [vmem:[%s3313_s6 + $0x70] sm:$0xff] }
 0x9c1   : > { %v3174_v38 = vadd.f32 %v2217_v19, %v1753_v36  ;;  %v1985_v19 = vld [vmem:[%s3313_s6 + $0x28] sm:$0xff]  ;;  %v2620_v36 = vpack.c.bf16 %v1993_v35, %v1992_v34 }
 0x9c2   : > { %v2608_v20 = vpack.c.bf16 %v1985_v19, %v1984_v17 }
 0x9c3   : > { %v1768_v39 = vsel %vm289_vm1, %v3174_v38, 0.0 }
 0x9c4   : > { %1769 = vadd.xlane.f32.xlu1 %v1768_v39  ;;  %2609 = vmatpush3.bf16.msra.mxu0 %v2608_v20  ;;  %v1995_v39 = vld [vmem:[%s3313_s6 + $0x78] sm:$0xff] }
 0x9c5   : > { %2610 = vmatprep.subr.bf16.mxu0 %v2771_v26 }
 0x9c8   : > { %2612 = vmatpush3.bf16.msra.mxu0 %v2611_v24 }
 0x9c9   : > { %2613 = vmatprep.subr.bf16.mxu0 %v2771_v26 }
 0x9cc   : > { %2615 = vmatpush3.bf16.msra.mxu0 %v2614_v29 }
 0x9cd   : > { %2616 = vmatprep.subr.bf16.mxu0 %v2771_v26 }
 0x9d0   : > { %2618 = vmatpush3.bf16.msra.mxu0 %v2617_v33 }
 0x9d1   : > { %2619 = vmatprep.subr.bf16.mxu0 %v2771_v26 }
 0x9d4   : > { %2621 = vmatpush3.bf16.msra.mxu0 %v2620_v36 }
 0x9d5   : > { %2622 = vmatprep.subr.bf16.mxu0 %v2771_v26 }
 0xa49   : > { %v1764_v40 = vpop.xlane.xlu1 %1763 }
 0xa4a   : > { %v1771_v41 = vmul.f32 0.03125, %v1764_v40  ;;  %v2623_v40 = vpack.c.bf16 %v1995_v39, %v1994_v37 }
 0xa4c   : > { %v1774_v42 = vsub.f32 %v3164_v23, %v1771_v41  ;;  %2624 = vmatpush3.bf16.msra.mxu0 %v2623_v40  ;;  %v2218_v41 = vld [vmem:[%s3309_s2 + $0x2] ss:$0 sm:$0xff] }
 0xa4d   : > { %v1767_v43 = vpop.xlane.xlu0 %1766 }
 0xa4e   : > { %v1772_v44 = vmul.f32 0.03125, %v1767_v43  ;;  %v1777_v45 = vmul.f32 %v1774_v42, %v1774_v42 }
 0xa50   : > { %v1775_v46 = vsub.f32 %v3169_v32, %v1772_v44  ;;  %v1780_v48 = vsel %vm282_vm0, %v1777_v45, 0.0 }
 0xa51   : > { %1781 = vadd.xlane.f32.xlu0 %v1780_v48  ;;  %v1770_v51 = vpop.xlane.xlu1 %1769 }
 0xa52   : > { %v1773_v53 = vmul.f32 0.03125, %v1770_v51  ;;  %v1778_v47 = vmul.f32 %v1775_v46, %v1775_v46 }
 0xa54   : > { %v1776_v49 = vsub.f32 %v3174_v38, %v1773_v53  ;;  %v1783_v50 = vsel %vm282_vm0, %v1778_v47, 0.0 }
 0xa55   : > { %1784 = vadd.xlane.f32.xlu1 %v1783_v50 }
 0xa56   : > { %v1779_v52 = vmul.f32 %v1776_v49, %v1776_v49 }
 0xa58   : > { %v1786_v54 = vsel %vm289_vm1, %v1779_v52, 0.0 }
 0xa59   : > { %1787 = vadd.xlane.f32.xlu0 %v1786_v54 }
 0xade   : > { %v1782_v61 = vpop.xlane.xlu0 %1781 }
 0xadf   : > { %v1789_v62 = vmul.f32 0.03125, %v1782_v61 }
 0xae1   : > { %v1792_v63 = vadd.f32 1e-05, %v1789_v62 }
 0xae2   : > { %v1785_v0 = vpop.xlane.xlu1 %1784 }
 0xae3   : > { %2742 = vrsqrt.f32 %v1792_v63  ;;  %v1790_v1 = vmul.f32 0.03125, %v1785_v0 }
 0xae5   : > { %v1793_v2 = vadd.f32 1e-05, %v1790_v1 }
 0xae6   : > { %v1788_v3 = vpop.xlane.xlu0 %1787 }
 0xae7   : > { %2744 = vrsqrt.f32 %v1793_v2  ;;  %v1791_v4 = vmul.f32 0.03125, %v1788_v3 }
 0xae9   : > { %v1794_v5 = vadd.f32 1e-05, %v1791_v4 }
 0xaeb   : > { %2746 = vrsqrt.f32 %v1794_v5 }
 0xaed   : > { %v2743_v6 = vpop.eup %2742 }
 0xaee   : > { %v1798_v7 = vmul.f32 %v2743_v6, %v1774_v42 }
 0xaf0   : > { %2512 = vmatmul.mubr.msk.f32.vlgmr.msra.gmra.mrb[42].mxu1 %vm282_vm0, %v1798_v7 }
 0xaf1   : > { %v2745_v10 = vpop.eup %2744  ;;  %2514 = vmatprep.mubr.msk.f32.mxu1 %vm2772_vm2, %v2773_v27 }
 0xaf2   : > { %v1799_v8 = vmul.f32 %v2745_v10, %v1775_v46 }
 0xaf4   : > { %2515 = vmatmul.mubr.msk.f32.gmra.mrb[44].mxu1 %vm282_vm0, %v1799_v8 }
 0xaf5   : > { %v2747_v15 = vpop.eup %2746  ;;  %2517 = vmatprep.mubr.msk.f32.mxu1 %vm2772_vm2, %v2773_v27 }
 0xaf6   : > { %v1800_v18 = vmul.f32 %v2747_v15, %v1776_v49 }
 0xaf8   : > { %2518 = vmatmul.mubr.msk.f32.gmra.mrb[46].mxu1 %vm282_vm0, %v1800_v18 }
 0xbc3   : > { %v1885_v42 = vpop.f32.mrb[42].mxu1 }
 0xbc4   : > { %v3262_v43 = vadd.f32 %v2218_v41, %v1885_v42  ;;  %v2513_v44 = vpop.f32.mrb[43].mxu1 }
 0xbc6   : > { %v3265_v26 = vmul.f32 0.70710677, %v3262_v43 }
 0xbc7   : > { %v1890_v45 = vpop.f32.mrb[44].mxu1 }
 0xbc8   : > { %v1905_v46 = vand.u32 2147483647, %v3265_v26  ;;  %v3268_v48 = vadd.f32 %v2218_v41, %v1890_v45  ;;  %v2516_v51 = vpop.f32.mrb[45].mxu1  ;;  %vm1965_vm8 = vcmp.ge.f32.partialorder %v3265_v26, 0.0 }
 0xbca   : > { %v1908_v53 = vmul.f32 0.3275911, %v1905_v46  ;;  %v3271_v47 = vmul.f32 0.70710677, %v3268_v48  ;;  %v1947_v61 = vsub.f32 0.0, %v1905_v46 }
 0xbcb   : > { %v1895_v49 = vpop.f32.mrb[46].mxu1 }
 0xbcc   : > { %v1911_v50 = vadd.f32 1.0, %v1908_v53  ;;  %v1906_v52 = vand.u32 2147483647, %v3271_v47  ;;  %v2519_v54 = vpop.f32.mrb[47].mxu1  ;;  %v3274_v55 = vadd.f32 %v2218_v41, %v1895_v49  ;;  %v1950_v0 = vmul.f32 %v1947_v61, %v1905_v46 }
 0xbcd   : > { %vm1966_vm9 = vcmp.ge.f32.partialorder %v3271_v47, 0.0 }
 0xbce   : > { %2748 = vrcp.f32 %v1911_v50  ;;  %v1909_v56 = vmul.f32 0.3275911, %v1906_v52  ;;  %v3277_v57 = vmul.f32 0.70710677, %v3274_v55  ;;  %v1948_v1 = vsub.f32 0.0, %v1906_v52 }
 0xbcf   : > { %v1953_v5 = vmul.f32 1.442695, %v1950_v0  ;;  %v1899_v50 = vmul.f32 0.5, %v3262_v43 }
 0xbd0   : > { %v1912_v58 = vadd.f32 1.0, %v1909_v56  ;;  %v1907_v60 = vand.u32 2147483647, %v3277_v57  ;;  %v1951_v6 = vmul.f32 %v1948_v1, %v1906_v52  ;;  %vm1967_vm10 = vcmp.ge.f32.partialorder %v3277_v57, 0.0 }
 0xbd2   : > { %2750 = vrcp.f32 %v1912_v58  ;;  %v1910_v59 = vmul.f32 0.3275911, %v1907_v60  ;;  %v1949_v10 = vsub.f32 0.0, %v1907_v60  ;;  %v1955_v9 = vmul.f32 1.442695, %v1951_v6 }
 0xbd4   : > { %v1913_v62 = vadd.f32 1.0, %v1910_v59  ;;  %v1952_v13 = vmul.f32 %v1949_v10, %v1907_v60 }
 0xbd6   : > { %2752 = vrcp.f32 %v1913_v62  ;;  %v1957_v22 = vmul.f32 1.442695, %v1952_v13  ;;  %v1900_v62 = vmul.f32 0.5, %v3268_v48 }
 0xbd7   : > { %2754 = vpow2.f32 %v1953_v5 }
 0xbd8   : > { %v2749_v63 = vpop.eup %2748  ;;  %2756 = vpow2.f32 %v1955_v9 }
 0xbd9   : > { %v1920_v2 = vmul.f32 1.0614054, %v2749_v63  ;;  %2758 = vpow2.f32 %v1957_v22 }
 0xbdb   : > { %v1923_v3 = vadd.f32 -1.4531521, %v1920_v2  ;;  %v1901_v2 = vmul.f32 0.5, %v3274_v55 }
 0xbdc   : > { %v2751_v4 = vpop.eup %2750 }
 0xbdd   : > { %v1926_v7 = vmul.f32 %v2749_v63, %v1923_v3  ;;  %v1921_v8 = vmul.f32 1.0614054, %v2751_v4  ;;  %v2222_v3 = vld [vmem:[%s3309_s2 + $0x3] ss:$0 sm:$0xff] }
 0xbdf   : > { %v1929_v15 = vadd.f32 1.4214138, %v1926_v7  ;;  %v1924_v18 = vadd.f32 -1.4531521, %v1921_v8 }
 0xbe0   : > { %v2753_v11 = vpop.eup %2752 }
 0xbe1   : > { %v1932_v12 = vmul.f32 %v2749_v63, %v1929_v15  ;;  %v1927_v14 = vmul.f32 %v2751_v4, %v1924_v18  ;;  %v1922_v16 = vmul.f32 1.0614054, %v2753_v11  ;;  %v2755_v34 = vpop.eup %2754 }
 0xbe2   : > { %v2757_v42 = vpop.eup %2756 }
 0xbe3   : > { %v1935_v17 = vadd.f32 -0.28449672, %v1932_v12  ;;  %v1930_v19 = vadd.f32 1.4214138, %v1927_v14  ;;  %v1925_v20 = vadd.f32 -1.4531521, %v1922_v16  ;;  %v2759_v56 = vpop.eup %2758 }
 0xbe5   : > { %v1938_v21 = vmul.f32 %v2749_v63, %v1935_v17  ;;  %v1933_v24 = vmul.f32 %v2751_v4, %v1930_v19  ;;  %v1928_v25 = vmul.f32 %v2753_v11, %v1925_v20 }
 0xbe7   : > { %v1941_v28 = vadd.f32 0.2548296, %v1938_v21  ;;  %v1936_v29 = vadd.f32 -0.28449672, %v1933_v24  ;;  %v1931_v30 = vadd.f32 1.4214138, %v1928_v25 }
 0xbe9   : > { %v1944_v31 = vmul.f32 %v2749_v63, %v1941_v28  ;;  %v1939_v33 = vmul.f32 %v2751_v4, %v1936_v29  ;;  %v1934_v35 = vmul.f32 %v2753_v11, %v1931_v30 }
 0xbeb   : > { %v1959_v36 = vmul.f32 %v2755_v34, %v1944_v31  ;;  %v1942_v37 = vadd.f32 0.2548296, %v1939_v33  ;;  %v1937_v39 = vadd.f32 -0.28449672, %v1934_v35 }
 0xbed   : > { %v1962_v40 = vsub.f32 1.0, %v1959_v36  ;;  %v1945_v41 = vmul.f32 %v2751_v4, %v1942_v37  ;;  %v1940_v44 = vmul.f32 %v2753_v11, %v1937_v39 }
 0xbef   : > { %v1968_v45 = vsub.f32 0.0, %v1962_v40  ;;  %v1960_v46 = vmul.f32 %v2757_v42, %v1945_v41  ;;  %v1943_v51 = vadd.f32 0.2548296, %v1940_v44 }
 0xbf1   : > { %v1971_v53 = vsel %vm1965_vm8, %v1962_v40, %v1968_v45  ;;  %v1963_v49 = vsub.f32 1.0, %v1960_v46  ;;  %v1946_v54 = vmul.f32 %v2753_v11, %v1943_v51 }
 0xbf2   : > { %v1974_v52 = vadd.f32 1.0, %v1971_v53 }
 0xbf3   : > { %v1969_v58 = vsub.f32 0.0, %v1963_v49  ;;  %v1961_v59 = vmul.f32 %v2759_v56, %v1946_v54 }
 0xbf4   : > { %v1977_v60 = vmul.f32 %v1974_v52, %v1899_v50 }
 0xbf5   : > { %v1972_v61 = vsel %vm1966_vm9, %v1963_v49, %v1969_v58  ;;  %v1964_v0 = vsub.f32 1.0, %v1961_v59 }
 0xbf6   : > { %2553 = vmatmul.mubr.f32.vlgmr.msra.gmra.mrb[36].mxu0 %v1977_v60  ;;  %v1975_v63 = vadd.f32 1.0, %v1972_v61 }
 0xbf7   : > { %2555 = vmatprep.mubr.msk.f32.mxu0 %vm2772_vm2, %v2773_v27  ;;  %v1970_v43 = vsub.f32 0.0, %v1964_v0 }
 0xbf8   : > { %v1978_v26 = vmul.f32 %v1975_v63, %v1900_v62 }
 0xbf9   : > { %v1973_v1 = vsel %vm1967_vm10, %v1964_v0, %v1970_v43 }
 0xbfa   : > { %2556 = vmatmul.mubr.f32.gmra.mrb[38].mxu0 %v1978_v26  ;;  %v1976_v47 = vadd.f32 1.0, %v1973_v1 }
 0xbfb   : > { %2558 = vmatprep.mubr.msk.f32.mxu0 %vm2772_vm2, %v2773_v27 }
 0xbfc   : > { %v1979_v48 = vmul.f32 %v1976_v47, %v1901_v2 }
 0xbfe   : > { %2559 = vmatmul.mubr.f32.gmra.mrb[40].mxu0 %v1979_v48 }
 0xcc9   : > { %v2067_v4 = vpop.f32.mrb[36].mxu0 }
 0xcca   : > { %v2068_v5 = vadd.f32 %v2222_v3, %v2067_v4  ;;  %v2554_v6 = vpop.f32.mrb[37].mxu0 }
 0xccc   : > { %v2081_v55 = vadd.f32 %v2068_v5, %v3164_v23 }
 0xccd   : > { %v2072_v57 = vpop.f32.mrb[38].mxu0 }
 0xcce   : > { %2084 = vst.msk [vmem:[%s278_s10] sm:$0xff] %vm282_vm0, %v2081_v55  ;;  %v2073_v27 = vadd.f32 %v2222_v3, %v2072_v57  ;;  %v2557_v7 = vpop.f32.mrb[39].mxu0 }
 0xcd0   : > { %v2082_v10 = vadd.f32 %v2073_v27, %v3169_v32 }
 0xcd1   : > { %v2077_v8 = vpop.f32.mrb[40].mxu0 }
 0xcd2   : > { %2085 = vst.msk [vmem:[%s278_s10 + $0x8] sm:$0xff] %vm282_vm0, %v2082_v10  ;;  %v2078_v15 = vadd.f32 %v2222_v3, %v2077_v8  ;;  %v2560_v18 = vpop.f32.mrb[41].mxu0 }
 0xcd4   : > { %v2083_v9 = vadd.f32 %v2078_v15, %v3174_v38 }
 0xcd6   : > { %2086 = vst.msk [vmem:[%s278_s10 + $0x10] sm:$0x1] %vm289_vm1, %v2083_v9 }
 0xcd7 PF: > { %s17_s24 = sadd.s32 1, %s2769_s24  }
 0xcd8   : > { %p14_p4 = scmp.ge.s32.totalorder %s17_s24, 4  }
 0xcda   :  { %16 = sbr.rel (!%p14_p4) target bundleno = 1 (0x1), region = 84 }

</bundles_post_ra>
